<compile_context>
chip_gen: v6e
topology: v6e:2x2x1
jax: 0.10.0
libtpu: 0.0.40
codegen_flags: <defaults>
</compile_context>

<pallas_src>
import functools

import jax
import jax.numpy as jnp
from jax.experimental import pallas as pl
from jax.experimental.pallas import tpu as pltpu

KERNEL_SIZE = 4
STRIDE = 2
PADDING = 1
LRELU_ALPHA = 0.2
BN_EPS = 1e-5


def _full_spec(shape):
    nd = len(shape)
    return pl.BlockSpec(shape, lambda i, _nd=nd: (0,) * _nd)


def _bn_lrelu(y, gamma, beta):
    """Training-mode BatchNorm (stats over columns, single pass) + LeakyReLU(0.2)."""
    m = y.shape[1]
    mean = jnp.sum(y, axis=1, keepdims=True) * (1.0 / m)
    var = jnp.sum(y * y, axis=1, keepdims=True) * (1.0 / m) - mean * mean
    var = jnp.maximum(var, 0.0)          # guard single-pass cancellation (rsqrt NaN)
    z = gamma * (y - mean) * jax.lax.rsqrt(var + BN_EPS) + beta
    return jnp.where(z >= 0.0, z, LRELU_ALPHA * z)


# ---------------------------------------------------------------------------
# The single fused kernel: conv stack + both MLP heads.
# ---------------------------------------------------------------------------
def _fused_kernel(*refs, batch, n_layers, head_combos, mxu_dtype):
    n_out = len(head_combos)
    out_refs = refs[len(refs) - n_out:]
    idx = 0

    # ---- conv front end ----------------------------------------------------
    cur = refs[idx][...]          # merged polyphase operand (4*C0, (L0/2)*batch)
    idx += 1
    h_last = None
    for layer in range(n_layers):
        w_ref, g_ref, b_ref = refs[idx], refs[idx + 1], refs[idx + 2]
        idx += 3
        o = w_ref.shape[0]
        m = cur.shape[1]
        # Conv1d(k=4, s=2, p=1) == ONE MXU matmul with K = 4*C_in.
        y = jnp.dot(w_ref[...], cur, preferred_element_type=jnp.float32)
        # NOTE: conv bias omitted on purpose -- training-mode BatchNorm subtracts
        # the per-channel mean, which cancels it exactly.
        h = _bn_lrelu(y, g_ref[...], b_ref[...])      # (O, L_out*batch), f32

        if layer == n_layers - 1:
            h_last = h
        else:
            # Build the next layer's merged polyphase operand with pure value
            # ops (lane slices + concats): no staging scratch, no masked stores.
            lq = m // (2 * batch)                     # next layer's half length
            hq = h.astype(mxu_dtype)
            he = jnp.concatenate(
                [hq[:, (2 * u) * batch:(2 * u + 1) * batch] for u in range(lq)],
                axis=1)
            ho = jnp.concatenate(
                [hq[:, (2 * u + 1) * batch:(2 * u + 2) * batch] for u in range(lq)],
                axis=1)
            z = jnp.zeros((o, batch), mxu_dtype)
            if lq > 1:
                ho_prev = jnp.concatenate([z, ho[:, :(lq - 1) * batch]], axis=1)
                he_next = jnp.concatenate([he[:, batch:], z], axis=1)
            else:
                ho_prev = z
                he_next = z
            cur = jnp.concatenate([he, ho_prev, ho, he_next], axis=0)  # (4*O, lq*batch)

    # ---- fused MLP heads on the register/VMEM-resident features ------------
    l_last = h_last.shape[1] // batch
    h_mx = h_last.astype(mxu_dtype)                   # cast once, shared by both heads
    for head_i, n_combo in enumerate(head_combos):
        # First LinearCombo consumes the flattened conv features; accumulate over
        # the (small) trailing time axis -> Flatten needs no transpose/reshape.
        w1_ref, g_ref, b_ref = refs[idx], refs[idx + 1], refs[idx + 2]
        idx += 3
        y = jnp.dot(w1_ref[0], h_mx[:, 0:batch], preferred_element_type=jnp.float32)
        for t in range(1, l_last):
            y = y + jnp.dot(w1_ref[t], h_mx[:, t * batch:(t + 1) * batch],
                            preferred_element_type=jnp.float32)
        zact = _bn_lrelu(y, g_ref[...], b_ref[...])
        # Remaining LinearCombos (if any).
        for _ in range(n_combo - 1):
            w_ref, g_ref, b_ref = refs[idx], refs[idx + 1], refs[idx + 2]
            idx += 3
            y = jnp.dot(w_ref[...], zact.astype(mxu_dtype),
                        preferred_element_type=jnp.float32)
            zact = _bn_lrelu(y, g_ref[...], b_ref[...])
        # Final plain Linear (bias kept -- no BatchNorm after it).
        wf_ref, bf_ref = refs[idx], refs[idx + 1]
        idx += 2
        out_refs[head_i][...] = (
            jnp.dot(wf_ref[...], zact.astype(mxu_dtype),
                    preferred_element_type=jnp.float32) + bf_ref[...])


# ---------------------------------------------------------------------------
# Host-side parameter / input preparation (one-time XLA glue).
# ---------------------------------------------------------------------------
def _prep_conv_weight(w, mxu_dtype):
    # PyTorch Conv1d weight (O, C, 4) -> merged polyphase matrix (O, 4C) acting
    # on rows [x[2t]; x[2t-1]; x[2t+1]; x[2t+2]].
    return jnp.concatenate([w[:, :, 1], w[:, :, 0], w[:, :, 2], w[:, :, 3]],
                           axis=1).astype(mxu_dtype)


def _pack_polyphase_input(x, mxu_dtype):
    # (N, C, L) -> merged polyphase operand (4C, (L/2)*N), column block t = batch
    # slab at output time t (lane-dense: time*batch on lanes).
    n, c, l = x.shape
    lh = l // 2
    xt = jnp.transpose(x, (1, 2, 0))                  # (C, L, N)
    xe = xt[:, 0::2, :].reshape(c, lh * n)            # x[2t]
    xo = xt[:, 1::2, :].reshape(c, lh * n)            # x[2t+1]
    z = jnp.zeros((c, n), x.dtype)
    xo_prev = jnp.concatenate([z, xo[:, :(lh - 1) * n]], axis=1)   # x[2t-1]
    xe_next = jnp.concatenate([xe[:, n:], z], axis=1)              # x[2t+2]
    return jnp.concatenate([xe, xo_prev, xo, xe_next], axis=0).astype(mxu_dtype)


def info_discriminator_forward(x, params, *, mxu_dtype=jnp.bfloat16):
    """Full InfoDiscriminator1D forward.

    x: (N, C, L) -> (critics (N, n_critics), latent_code (N, latent_dim, 2))
    """
    n, c, l = x.shape
    conv_params = params["conv"]
    n_layers = len(conv_params)
    assert l % (2 ** n_layers) == 0, "in_features must be divisible by 2**n_layers"

    inputs = [_pack_polyphase_input(x, mxu_dtype)]
    channels = [c]
    for (w, _b, gamma, beta) in conv_params:
        o = w.shape[0]
        inputs += [_prep_conv_weight(w, mxu_dtype),
                   gamma.reshape(o, 1).astype(jnp.float32),
                   beta.reshape(o, 1).astype(jnp.float32)]
        channels.append(o)
    c_last = channels[-1]
    l_last = l // 2 ** n_layers

    head_combos, head_out = [], []
    for combos, (wf, bf) in (params["critics"], params["latent"]):
        head_combos.append(len(combos))
        # First combo weight (H1, C_last*L_last) -> per-time-slab (L_last, H1, C_last).
        w1, _b1, g1, bt1 = combos[0]
        h1 = w1.shape[0]
        w1s = jnp.transpose(w1.reshape(h1, c_last, l_last), (2, 0, 1))
        inputs += [w1s.astype(mxu_dtype),
                   g1.reshape(h1, 1).astype(jnp.float32),
                   bt1.reshape(h1, 1).astype(jnp.float32)]
        for (w, _b, g, bt) in combos[1:]:
            o = w.shape[0]
            inputs += [w.astype(mxu_dtype),
                       g.reshape(o, 1).astype(jnp.float32),
                       bt.reshape(o, 1).astype(jnp.float32)]
        inputs += [wf.astype(mxu_dtype), bf.reshape(-1, 1).astype(jnp.float32)]
        head_out.append(wf.shape[0])

    out_shapes = tuple(jax.ShapeDtypeStruct((r, n), jnp.float32) for r in head_out)

    # Advisory cost hint.
    flops = 0
    lh_i = l
    for i in range(n_layers):
        lh_i //= 2
        flops += 2 * channels[i + 1] * (4 * channels[i]) * (lh_i * n)
    for combos, (wf, _bf) in (params["critics"], params["latent"]):
        for (w, *_rest) in combos:
            flops += 2 * w.shape[0] * w.shape[1] * n
        flops += 2 * wf.shape[0] * wf.shape[1] * n
    bytes_accessed = sum(int(a.size) * a.dtype.itemsize for a in inputs)
    bytes_accessed += sum(r * n * 4 for r in head_out)

    kernel = functools.partial(_fused_kernel, batch=n, n_layers=n_layers,
                               head_combos=tuple(head_combos), mxu_dtype=mxu_dtype)
    critics_t, latent_t = pl.pallas_call(
        kernel,
        out_shape=out_shapes,
        grid=(1,),
        in_specs=[_full_spec(a.shape) for a in inputs],
        out_specs=tuple(_full_spec(s.shape) for s in out_shapes),
        compiler_params=pltpu.CompilerParams(dimension_semantics=("arbitrary",)),
        cost_estimate=pl.CostEstimate(flops=int(flops),
                                      transcendentals=int(sum(channels[1:])),
                                      bytes_accessed=int(bytes_accessed)),
    )(*inputs)

    latent_dim = head_out[1] // 2
    critics = critics_t.T                               # (N, n_critics)
    latent = latent_t.T.reshape(n, latent_dim, 2)       # (N, latent_dim, 2)
    return critics, latent


# ---------------------------------------------------------------------------
# Parameter init (synthetic, PyTorch-like shapes) and pure-JAX reference.
# ---------------------------------------------------------------------------
def init_params(key, in_channels, conv_channels, m_features, n_critics,
                latent_dim, crt_layers, pred_layers):
    def uniform(k, shape, fan_in):
        bound = 1.0 / jnp.sqrt(fan_in)
        return jax.random.uniform(k, shape, jnp.float32, -bound, bound)

    params = {"conv": []}
    chans = [in_channels] + list(conv_channels)
    for ci, co in zip(chans[:-1], chans[1:]):
        key, kw, kb, kg, kbeta = jax.random.split(key, 5)
        fan_in = ci * KERNEL_SIZE
        w = uniform(kw, (co, ci, KERNEL_SIZE), fan_in)
        b = uniform(kb, (co,), fan_in)
        gamma = 1.0 + 0.1 * jax.random.normal(kg, (co,), jnp.float32)
        beta = 0.1 * jax.random.normal(kbeta, (co,), jnp.float32)
        params["conv"].append((w, b, gamma, beta))

    def make_head(key, in_f, widths, out_f):
        combos, fi = [], in_f
        for w_out in widths:
            key, kw, kb, kg, kbeta = jax.random.split(key, 5)
            w = uniform(kw, (w_out, fi), fi)
            b = uniform(kb, (w_out,), fi)
            gamma = 1.0 + 0.1 * jax.random.normal(kg, (w_out,), jnp.float32)
            beta = 0.1 * jax.random.normal(kbeta, (w_out,), jnp.float32)
            combos.append((w, b, gamma, beta))
            fi = w_out
        key, kw, kb = jax.random.split(key, 3)
        return key, (combos, (uniform(kw, (out_f, fi), fi), uniform(kb, (out_f,), fi)))

    key, params["critics"] = make_head(key, m_features, crt_layers, n_critics)
    key, params["latent"] = make_head(key, m_features, pred_layers, 2 * latent_dim)
    return params


def reference_forward(x, params):
    """Pure-JAX reference with PyTorch training-mode semantics (HIGHEST precision)."""
    h = x
    for (w, b, gamma, beta) in params["conv"]:
        n, c, l = h.shape
        l_out = (l + 2 * PADDING - KERNEL_SIZE) // STRIDE + 1
        h_pad = jnp.pad(h, ((0, 0), (0, 0), (PADDING, PADDING)))
        patches = jnp.stack(
            [h_pad[:, :, STRIDE * t:STRIDE * t + KERNEL_SIZE] for t in range(l_out)],
            axis=1)                                          # (N, L_out, C, K)
        y = jnp.einsum("ntck,ock->not", patches, w,
                       precision=jax.lax.Precision.HIGHEST) + b[None, :, None]
        mean = jnp.mean(y, axis=(0, 2), keepdims=True)
        var = jnp.mean(jnp.square(y - mean), axis=(0, 2), keepdims=True)
        z = gamma[None, :, None] * (y - mean) * jax.lax.rsqrt(var + BN_EPS) \
            + beta[None, :, None]
        h = jnp.where(z >= 0.0, z, LRELU_ALPHA * z)
    f = h.reshape(h.shape[0], -1)

    def head(feat, head_params):
        combos, (wf, bf) = head_params
        z = feat
        for (w, b, gamma, beta) in combos:
            y = jnp.dot(z, w.T, precision=jax.lax.Precision.HIGHEST) + b[None, :]
            mean = jnp.mean(y, axis=0, keepdims=True)
            var = jnp.mean(jnp.square(y - mean), axis=0, keepdims=True)
            zz = gamma[None, :] * (y - mean) * jax.lax.rsqrt(var + BN_EPS) + beta[None, :]
            z = jnp.where(zz >= 0.0, zz, LRELU_ALPHA * zz)
        return jnp.dot(z, wf.T, precision=jax.lax.Precision.HIGHEST) + bf[None, :]

    critics = head(f, params["critics"])
    latent = head(f, params["latent"])
    latent_dim = latent.shape[1] // 2
    return critics, latent.reshape(-1, latent_dim, 2)


if __name__ == "__main__":
    # Small shapes consistent with the module:
    #   batch N=8, in_channels=4, in_features=16, conv_channels=[8, 16]
    #   -> m_features = 16 // 2**2 * 16 = 64; n_critics=3, latent_dim=4.
    N, IN_CHANNELS, IN_FEATURES = 8, 4, 16
    CONV_CHANNELS = [8, 16]
    N_CRITICS, LATENT_DIM = 3, 4
    CRT_LAYERS, PRED_LAYERS = [32], [32]
    M_FEATURES = IN_FEATURES // 2 ** len(CONV_CHANNELS) * CONV_CHANNELS[-1]

    key = jax.random.PRNGKey(0)
    k_x, k_p = jax.random.split(key)
    x = jax.random.normal(k_x, (N, IN_CHANNELS, IN_FEATURES), jnp.float32)
    params = init_params(k_p, IN_CHANNELS, CONV_CHANNELS, M_FEATURES,
                         N_CRITICS, LATENT_DIM, CRT_LAYERS, PRED_LAYERS)

    ref_critics, ref_latent = reference_forward(x, params)

    # (1) f32 MXU operands: tight check of the fused-kernel logic (merged
    #     polyphase conv, layout, BN stats/bias-cancellation, flatten order,
    #     head wiring).
    critics_f32, latent_f32 = info_discriminator_forward(x, params,
                                                         mxu_dtype=jnp.float32)
    jax.block_until_ready((critics_f32, latent_f32))
    assert critics_f32.shape == (N, N_CRITICS), critics_f32.shape
    assert latent_f32.shape == (N, LATENT_DIM, 2), latent_f32.shape
    for got, want in ((critics_f32, ref_critics), (latent_f32, ref_latent)):
        assert bool(jnp.all(jnp.isfinite(got)))
        assert jnp.allclose(got, want, rtol=2e-2, atol=2e-2), \
            float(jnp.max(jnp.abs(got - want)))

    # (2) bf16 MXU operands (deployment default on v6e/v7x): loose sanity check.
    critics_bf16, latent_bf16 = info_discriminator_forward(x, params,
                                                           mxu_dtype=jnp.bfloat16)
    jax.block_until_ready((critics_bf16, latent_bf16))
    assert critics_bf16.shape == (N, N_CRITICS)
    assert latent_bf16.shape == (N, LATENT_DIM, 2)
    for got, want in ((critics_bf16, ref_critics), (latent_bf16, ref_latent)):
        assert bool(jnp.all(jnp.isfinite(got)))
        assert jnp.allclose(got, want, rtol=5e-1, atol=5e-1)

    print("KERNEL_OK")
</pallas_src>

<mosaic_0001>
module attributes {stable_mosaic.version = 11 : i64} {
  func.func @_fused_kernel(%arg0: i32, %arg1: memref<16x64xf32, #tpu.memory_space<vmem>>, %arg2: memref<8x16xf32, #tpu.memory_space<vmem>>, %arg3: memref<8x1xf32, #tpu.memory_space<vmem>>, %arg4: memref<8x1xf32, #tpu.memory_space<vmem>>, %arg5: memref<16x32xf32, #tpu.memory_space<vmem>>, %arg6: memref<16x1xf32, #tpu.memory_space<vmem>>, %arg7: memref<16x1xf32, #tpu.memory_space<vmem>>, %arg8: memref<4x32x16xf32, #tpu.memory_space<vmem>>, %arg9: memref<32x1xf32, #tpu.memory_space<vmem>>, %arg10: memref<32x1xf32, #tpu.memory_space<vmem>>, %arg11: memref<3x32xf32, #tpu.memory_space<vmem>>, %arg12: memref<3x1xf32, #tpu.memory_space<vmem>>, %arg13: memref<4x32x16xf32, #tpu.memory_space<vmem>>, %arg14: memref<32x1xf32, #tpu.memory_space<vmem>>, %arg15: memref<32x1xf32, #tpu.memory_space<vmem>>, %arg16: memref<8x32xf32, #tpu.memory_space<vmem>>, %arg17: memref<8x1xf32, #tpu.memory_space<vmem>>, %arg18: memref<3x8xf32, #tpu.memory_space<vmem>>, %arg19: memref<8x8xf32, #tpu.memory_space<vmem>>) attributes {dimension_semantics = [#tpu.dimension_semantics<arbitrary>], iteration_bounds = array<i64: 1>, scalar_prefetch = 0 : i64, scratch_operands = 0 : i64, tpu.core_type = #tpu.core_type<tc>, window_params = [{pipeline_mode = #tpu.pipeline_mode<synchronous>, transform_indices = @transform_0, window_bounds = array<i64: 16, 64>}, {pipeline_mode = #tpu.pipeline_mode<synchronous>, transform_indices = @transform_1, window_bounds = array<i64: 8, 16>}, {pipeline_mode = #tpu.pipeline_mode<synchronous>, transform_indices = @transform_2, window_bounds = array<i64: 8, 1>}, {pipeline_mode = #tpu.pipeline_mode<synchronous>, transform_indices = @transform_3, window_bounds = array<i64: 8, 1>}, {pipeline_mode = #tpu.pipeline_mode<synchronous>, transform_indices = @transform_4, window_bounds = array<i64: 16, 32>}, {pipeline_mode = #tpu.pipeline_mode<synchronous>, transform_indices = @transform_5, window_bounds = array<i64: 16, 1>}, {pipeline_mode = #tpu.pipeline_mode<synchronous>, transform_indices = @transform_6, window_bounds = array<i64: 16, 1>}, {pipeline_mode = #tpu.pipeline_mode<synchronous>, transform_indices = @transform_7, window_bounds = array<i64: 4, 32, 16>}, {pipeline_mode = #tpu.pipeline_mode<synchronous>, transform_indices = @transform_8, window_bounds = array<i64: 32, 1>}, {pipeline_mode = #tpu.pipeline_mode<synchronous>, transform_indices = @transform_9, window_bounds = array<i64: 32, 1>}, {pipeline_mode = #tpu.pipeline_mode<synchronous>, transform_indices = @transform_10, window_bounds = array<i64: 3, 32>}, {pipeline_mode = #tpu.pipeline_mode<synchronous>, transform_indices = @transform_11, window_bounds = array<i64: 3, 1>}, {pipeline_mode = #tpu.pipeline_mode<synchronous>, transform_indices = @transform_12, window_bounds = array<i64: 4, 32, 16>}, {pipeline_mode = #tpu.pipeline_mode<synchronous>, transform_indices = @transform_13, window_bounds = array<i64: 32, 1>}, {pipeline_mode = #tpu.pipeline_mode<synchronous>, transform_indices = @transform_14, window_bounds = array<i64: 32, 1>}, {pipeline_mode = #tpu.pipeline_mode<synchronous>, transform_indices = @transform_15, window_bounds = array<i64: 8, 32>}, {pipeline_mode = #tpu.pipeline_mode<synchronous>, transform_indices = @transform_16, window_bounds = array<i64: 8, 1>}, {pipeline_mode = #tpu.pipeline_mode<synchronous>, transform_indices = @transform_17, window_bounds = array<i64: 3, 8>}, {pipeline_mode = #tpu.pipeline_mode<synchronous>, transform_indices = @transform_18, window_bounds = array<i64: 8, 8>}]} {
    %c0 = arith.constant 0 : index
    %c0_0 = arith.constant 0 : index
    %0 = vector.load %arg1[%c0, %c0_0] : memref<16x64xf32, #tpu.memory_space<vmem>>, vector<16x64xf32>
    %c0_1 = arith.constant 0 : index
    %c0_2 = arith.constant 0 : index
    %1 = vector.load %arg2[%c0_1, %c0_2] : memref<8x16xf32, #tpu.memory_space<vmem>>, vector<8x16xf32>
    %cst = arith.constant dense<0.000000e+00> : vector<8x64xf32>
    %2 = tpu.matmul %1, %0, %cst {dimension_numbers = #tpu.dot_dimension_numbers<[1], [0], [0], [1], [0, 0, 1, 1], [], []>} : vector<8x16xf32>, vector<16x64xf32>, vector<8x64xf32> -> vector<8x64xf32>
    %c0_3 = arith.constant 0 : index
    %c0_4 = arith.constant 0 : index
    %3 = vector.load %arg3[%c0_3, %c0_4] : memref<8x1xf32, #tpu.memory_space<vmem>>, vector<8x1xf32>
    %c0_5 = arith.constant 0 : index
    %c0_6 = arith.constant 0 : index
    %4 = vector.load %arg4[%c0_5, %c0_6] : memref<8x1xf32, #tpu.memory_space<vmem>>, vector<8x1xf32>
    %cst_7 = arith.constant dense<0.000000e+00> : vector<8xf32>
    %5 = vector.multi_reduction <add>, %2, %cst_7 [1] : vector<8x64xf32> to vector<8xf32>
    %6 = vector.shape_cast %5 : vector<8xf32> to vector<8x1xf32>
    %cst_8 = arith.constant 1.562500e-02 : f32
    %7 = vector.broadcast %cst_8 : f32 to vector<8x1xf32>
    %8 = arith.mulf %6, %7 : vector<8x1xf32>
    %9 = arith.mulf %2, %2 : vector<8x64xf32>
    %cst_9 = arith.constant dense<0.000000e+00> : vector<8xf32>
    %10 = vector.multi_reduction <add>, %9, %cst_9 [1] : vector<8x64xf32> to vector<8xf32>
    %11 = vector.shape_cast %10 : vector<8xf32> to vector<8x1xf32>
    %cst_10 = arith.constant 1.562500e-02 : f32
    %12 = vector.broadcast %cst_10 : f32 to vector<8x1xf32>
    %13 = arith.mulf %11, %12 : vector<8x1xf32>
    %14 = arith.mulf %8, %8 : vector<8x1xf32>
    %15 = arith.subf %13, %14 : vector<8x1xf32>
    %cst_11 = arith.constant 0.000000e+00 : f32
    %16 = vector.broadcast %cst_11 : f32 to vector<8x1xf32>
    %17 = arith.maximumf %15, %16 : vector<8x1xf32>
    %18 = vector.broadcast %8 : vector<8x1xf32> to vector<8x64xf32>
    %19 = arith.subf %2, %18 : vector<8x64xf32>
    %20 = vector.broadcast %3 : vector<8x1xf32> to vector<8x64xf32>
    %21 = arith.mulf %20, %19 : vector<8x64xf32>
    %cst_12 = arith.constant 9.99999974E-6 : f32
    %22 = vector.broadcast %cst_12 : f32 to vector<8x1xf32>
    %23 = arith.addf %17, %22 : vector<8x1xf32>
    %24 = math.rsqrt %23 : vector<8x1xf32>
    %25 = vector.broadcast %24 : vector<8x1xf32> to vector<8x64xf32>
    %26 = arith.mulf %21, %25 : vector<8x64xf32>
    %27 = vector.broadcast %4 : vector<8x1xf32> to vector<8x64xf32>
    %28 = arith.addf %26, %27 : vector<8x64xf32>
    %cst_13 = arith.constant 0.000000e+00 : f32
    %29 = vector.broadcast %cst_13 : f32 to vector<8x64xf32>
    %30 = arith.cmpf oge, %28, %29 : vector<8x64xf32>
    %cst_14 = arith.constant 2.000000e-01 : f32
    %31 = vector.broadcast %cst_14 : f32 to vector<8x64xf32>
    %32 = arith.mulf %31, %28 : vector<8x64xf32>
    %33 = arith.select %30, %28, %32 : vector<8x64xi1>, vector<8x64xf32>
    %34 = vector.extract_strided_slice %33 {offsets = [0, 0], sizes = [8, 8], strides = [1, 1]} : vector<8x64xf32> to vector<8x8xf32>
    %35 = vector.extract_strided_slice %33 {offsets = [0, 16], sizes = [8, 8], strides = [1, 1]} : vector<8x64xf32> to vector<8x8xf32>
    %36 = vector.extract_strided_slice %33 {offsets = [0, 32], sizes = [8, 8], strides = [1, 1]} : vector<8x64xf32> to vector<8x8xf32>
    %37 = vector.extract_strided_slice %33 {offsets = [0, 48], sizes = [8, 8], strides = [1, 1]} : vector<8x64xf32> to vector<8x8xf32>
    %38 = tpu.concatenate %34, %35, %36, %37 in 1 : vector<8x8xf32>, vector<8x8xf32>, vector<8x8xf32>, vector<8x8xf32> -> vector<8x32xf32>
    %39 = vector.extract_strided_slice %33 {offsets = [0, 8], sizes = [8, 8], strides = [1, 1]} : vector<8x64xf32> to vector<8x8xf32>
    %40 = vector.extract_strided_slice %33 {offsets = [0, 24], sizes = [8, 8], strides = [1, 1]} : vector<8x64xf32> to vector<8x8xf32>
    %41 = vector.extract_strided_slice %33 {offsets = [0, 40], sizes = [8, 8], strides = [1, 1]} : vector<8x64xf32> to vector<8x8xf32>
    %42 = vector.extract_strided_slice %33 {offsets = [0, 56], sizes = [8, 8], strides = [1, 1]} : vector<8x64xf32> to vector<8x8xf32>
    %43 = tpu.concatenate %39, %40, %41, %42 in 1 : vector<8x8xf32>, vector<8x8xf32>, vector<8x8xf32>, vector<8x8xf32> -> vector<8x32xf32>
    %cst_15 = arith.constant 0.000000e+00 : f32
    %44 = vector.broadcast %cst_15 : f32 to vector<8x8xf32>
    %45 = vector.extract_strided_slice %43 {offsets = [0, 0], sizes = [8, 24], strides = [1, 1]} : vector<8x32xf32> to vector<8x24xf32>
    %46 = tpu.concatenate %44, %45 in 1 : vector<8x8xf32>, vector<8x24xf32> -> vector<8x32xf32>
    %47 = vector.extract_strided_slice %38 {offsets = [0, 8], sizes = [8, 24], strides = [1, 1]} : vector<8x32xf32> to vector<8x24xf32>
    %48 = tpu.concatenate %47, %44 in 1 : vector<8x24xf32>, vector<8x8xf32> -> vector<8x32xf32>
    %49 = tpu.concatenate %38, %46, %43, %48 in 0 : vector<8x32xf32>, vector<8x32xf32>, vector<8x32xf32>, vector<8x32xf32> -> vector<32x32xf32>
    %c0_16 = arith.constant 0 : index
    %c0_17 = arith.constant 0 : index
    %50 = vector.load %arg5[%c0_16, %c0_17] : memref<16x32xf32, #tpu.memory_space<vmem>>, vector<16x32xf32>
    %cst_18 = arith.constant dense<0.000000e+00> : vector<16x32xf32>
    %51 = tpu.matmul %50, %49, %cst_18 {dimension_numbers = #tpu.dot_dimension_numbers<[1], [0], [0], [1], [0, 0, 1, 1], [], []>} : vector<16x32xf32>, vector<32x32xf32>, vector<16x32xf32> -> vector<16x32xf32>
    %c0_19 = arith.constant 0 : index
    %c0_20 = arith.constant 0 : index
    %52 = vector.load %arg6[%c0_19, %c0_20] : memref<16x1xf32, #tpu.memory_space<vmem>>, vector<16x1xf32>
    %c0_21 = arith.constant 0 : index
    %c0_22 = arith.constant 0 : index
    %53 = vector.load %arg7[%c0_21, %c0_22] : memref<16x1xf32, #tpu.memory_space<vmem>>, vector<16x1xf32>
    %cst_23 = arith.constant dense<0.000000e+00> : vector<16xf32>
    %54 = vector.multi_reduction <add>, %51, %cst_23 [1] : vector<16x32xf32> to vector<16xf32>
    %55 = vector.shape_cast %54 : vector<16xf32> to vector<16x1xf32>
    %cst_24 = arith.constant 3.125000e-02 : f32
    %56 = vector.broadcast %cst_24 : f32 to vector<16x1xf32>
    %57 = arith.mulf %55, %56 : vector<16x1xf32>
    %58 = arith.mulf %51, %51 : vector<16x32xf32>
    %cst_25 = arith.constant dense<0.000000e+00> : vector<16xf32>
    %59 = vector.multi_reduction <add>, %58, %cst_25 [1] : vector<16x32xf32> to vector<16xf32>
    %60 = vector.shape_cast %59 : vector<16xf32> to vector<16x1xf32>
    %cst_26 = arith.constant 3.125000e-02 : f32
    %61 = vector.broadcast %cst_26 : f32 to vector<16x1xf32>
    %62 = arith.mulf %60, %61 : vector<16x1xf32>
    %63 = arith.mulf %57, %57 : vector<16x1xf32>
    %64 = arith.subf %62, %63 : vector<16x1xf32>
    %cst_27 = arith.constant 0.000000e+00 : f32
    %65 = vector.broadcast %cst_27 : f32 to vector<16x1xf32>
    %66 = arith.maximumf %64, %65 : vector<16x1xf32>
    %67 = vector.broadcast %57 : vector<16x1xf32> to vector<16x32xf32>
    %68 = arith.subf %51, %67 : vector<16x32xf32>
    %69 = vector.broadcast %52 : vector<16x1xf32> to vector<16x32xf32>
    %70 = arith.mulf %69, %68 : vector<16x32xf32>
    %cst_28 = arith.constant 9.99999974E-6 : f32
    %71 = vector.broadcast %cst_28 : f32 to vector<16x1xf32>
    %72 = arith.addf %66, %71 : vector<16x1xf32>
    %73 = math.rsqrt %72 : vector<16x1xf32>
    %74 = vector.broadcast %73 : vector<16x1xf32> to vector<16x32xf32>
    %75 = arith.mulf %70, %74 : vector<16x32xf32>
    %76 = vector.broadcast %53 : vector<16x1xf32> to vector<16x32xf32>
    %77 = arith.addf %75, %76 : vector<16x32xf32>
    %cst_29 = arith.constant 0.000000e+00 : f32
    %78 = vector.broadcast %cst_29 : f32 to vector<16x32xf32>
    %79 = arith.cmpf oge, %77, %78 : vector<16x32xf32>
    %cst_30 = arith.constant 2.000000e-01 : f32
    %80 = vector.broadcast %cst_30 : f32 to vector<16x32xf32>
    %81 = arith.mulf %80, %77 : vector<16x32xf32>
    %82 = arith.select %79, %77, %81 : vector<16x32xi1>, vector<16x32xf32>
    %c0_31 = arith.constant 0 : index
    %c0_32 = arith.constant 0 : index
    %c0_33 = arith.constant 0 : index
    %83 = vector.load %arg8[%c0_31, %c0_32, %c0_33] : memref<4x32x16xf32, #tpu.memory_space<vmem>>, vector<1x32x16xf32>
    %84 = vector.shape_cast %83 : vector<1x32x16xf32> to vector<32x16xf32>
    %85 = vector.extract_strided_slice %82 {offsets = [0, 0], sizes = [16, 8], strides = [1, 1]} : vector<16x32xf32> to vector<16x8xf32>
    %cst_34 = arith.constant dense<0.000000e+00> : vector<32x8xf32>
    %86 = tpu.matmul %84, %85, %cst_34 {dimension_numbers = #tpu.dot_dimension_numbers<[1], [0], [0], [1], [0, 0, 1, 1], [], []>} : vector<32x16xf32>, vector<16x8xf32>, vector<32x8xf32> -> vector<32x8xf32>
    %c1 = arith.constant 1 : index
    %c0_35 = arith.constant 0 : index
    %c0_36 = arith.constant 0 : index
    %87 = vector.load %arg8[%c1, %c0_35, %c0_36] : memref<4x32x16xf32, #tpu.memory_space<vmem>>, vector<1x32x16xf32>
    %88 = vector.shape_cast %87 : vector<1x32x16xf32> to vector<32x16xf32>
    %89 = vector.extract_strided_slice %82 {offsets = [0, 8], sizes = [16, 8], strides = [1, 1]} : vector<16x32xf32> to vector<16x8xf32>
    %cst_37 = arith.constant dense<0.000000e+00> : vector<32x8xf32>
    %90 = tpu.matmul %88, %89, %cst_37 {dimension_numbers = #tpu.dot_dimension_numbers<[1], [0], [0], [1], [0, 0, 1, 1], [], []>} : vector<32x16xf32>, vector<16x8xf32>, vector<32x8xf32> -> vector<32x8xf32>
    %91 = arith.addf %86, %90 : vector<32x8xf32>
    %c2 = arith.constant 2 : index
    %c0_38 = arith.constant 0 : index
    %c0_39 = arith.constant 0 : index
    %92 = vector.load %arg8[%c2, %c0_38, %c0_39] : memref<4x32x16xf32, #tpu.memory_space<vmem>>, vector<1x32x16xf32>
    %93 = vector.shape_cast %92 : vector<1x32x16xf32> to vector<32x16xf32>
    %94 = vector.extract_strided_slice %82 {offsets = [0, 16], sizes = [16, 8], strides = [1, 1]} : vector<16x32xf32> to vector<16x8xf32>
    %cst_40 = arith.constant dense<0.000000e+00> : vector<32x8xf32>
    %95 = tpu.matmul %93, %94, %cst_40 {dimension_numbers = #tpu.dot_dimension_numbers<[1], [0], [0], [1], [0, 0, 1, 1], [], []>} : vector<32x16xf32>, vector<16x8xf32>, vector<32x8xf32> -> vector<32x8xf32>
    %96 = arith.addf %91, %95 : vector<32x8xf32>
    %c3 = arith.constant 3 : index
    %c0_41 = arith.constant 0 : index
    %c0_42 = arith.constant 0 : index
    %97 = vector.load %arg8[%c3, %c0_41, %c0_42] : memref<4x32x16xf32, #tpu.memory_space<vmem>>, vector<1x32x16xf32>
    %98 = vector.shape_cast %97 : vector<1x32x16xf32> to vector<32x16xf32>
    %99 = vector.extract_strided_slice %82 {offsets = [0, 24], sizes = [16, 8], strides = [1, 1]} : vector<16x32xf32> to vector<16x8xf32>
    %cst_43 = arith.constant dense<0.000000e+00> : vector<32x8xf32>
    %100 = tpu.matmul %98, %99, %cst_43 {dimension_numbers = #tpu.dot_dimension_numbers<[1], [0], [0], [1], [0, 0, 1, 1], [], []>} : vector<32x16xf32>, vector<16x8xf32>, vector<32x8xf32> -> vector<32x8xf32>
    %101 = arith.addf %96, %100 : vector<32x8xf32>
    %c0_44 = arith.constant 0 : index
    %c0_45 = arith.constant 0 : index
    %102 = vector.load %arg9[%c0_44, %c0_45] : memref<32x1xf32, #tpu.memory_space<vmem>>, vector<32x1xf32>
    %c0_46 = arith.constant 0 : index
    %c0_47 = arith.constant 0 : index
    %103 = vector.load %arg10[%c0_46, %c0_47] : memref<32x1xf32, #tpu.memory_space<vmem>>, vector<32x1xf32>
    %cst_48 = arith.constant dense<0.000000e+00> : vector<32xf32>
    %104 = vector.multi_reduction <add>, %101, %cst_48 [1] : vector<32x8xf32> to vector<32xf32>
    %105 = vector.shape_cast %104 : vector<32xf32> to vector<32x1xf32>
    %cst_49 = arith.constant 1.250000e-01 : f32
    %106 = vector.broadcast %cst_49 : f32 to vector<32x1xf32>
    %107 = arith.mulf %105, %106 : vector<32x1xf32>
    %108 = arith.mulf %101, %101 : vector<32x8xf32>
    %cst_50 = arith.constant dense<0.000000e+00> : vector<32xf32>
    %109 = vector.multi_reduction <add>, %108, %cst_50 [1] : vector<32x8xf32> to vector<32xf32>
    %110 = vector.shape_cast %109 : vector<32xf32> to vector<32x1xf32>
    %cst_51 = arith.constant 1.250000e-01 : f32
    %111 = vector.broadcast %cst_51 : f32 to vector<32x1xf32>
    %112 = arith.mulf %110, %111 : vector<32x1xf32>
    %113 = arith.mulf %107, %107 : vector<32x1xf32>
    %114 = arith.subf %112, %113 : vector<32x1xf32>
    %cst_52 = arith.constant 0.000000e+00 : f32
    %115 = vector.broadcast %cst_52 : f32 to vector<32x1xf32>
    %116 = arith.maximumf %114, %115 : vector<32x1xf32>
    %117 = vector.broadcast %107 : vector<32x1xf32> to vector<32x8xf32>
    %118 = arith.subf %101, %117 : vector<32x8xf32>
    %119 = vector.broadcast %102 : vector<32x1xf32> to vector<32x8xf32>
    %120 = arith.mulf %119, %118 : vector<32x8xf32>
    %cst_53 = arith.constant 9.99999974E-6 : f32
    %121 = vector.broadcast %cst_53 : f32 to vector<32x1xf32>
    %122 = arith.addf %116, %121 : vector<32x1xf32>
    %123 = math.rsqrt %122 : vector<32x1xf32>
    %124 = vector.broadcast %123 : vector<32x1xf32> to vector<32x8xf32>
    %125 = arith.mulf %120, %124 : vector<32x8xf32>
    %126 = vector.broadcast %103 : vector<32x1xf32> to vector<32x8xf32>
    %127 = arith.addf %125, %126 : vector<32x8xf32>
    %cst_54 = arith.constant 0.000000e+00 : f32
    %128 = vector.broadcast %cst_54 : f32 to vector<32x8xf32>
    %129 = arith.cmpf oge, %127, %128 : vector<32x8xf32>
    %cst_55 = arith.constant 2.000000e-01 : f32
    %130 = vector.broadcast %cst_55 : f32 to vector<32x8xf32>
    %131 = arith.mulf %130, %127 : vector<32x8xf32>
    %132 = arith.select %129, %127, %131 : vector<32x8xi1>, vector<32x8xf32>
    %c0_56 = arith.constant 0 : index
    %c0_57 = arith.constant 0 : index
    %133 = vector.load %arg11[%c0_56, %c0_57] : memref<3x32xf32, #tpu.memory_space<vmem>>, vector<3x32xf32>
    %cst_58 = arith.constant dense<0.000000e+00> : vector<3x8xf32>
    %134 = tpu.matmul %133, %132, %cst_58 {dimension_numbers = #tpu.dot_dimension_numbers<[1], [0], [0], [1], [0, 0, 1, 1], [], []>} : vector<3x32xf32>, vector<32x8xf32>, vector<3x8xf32> -> vector<3x8xf32>
    %c0_59 = arith.constant 0 : index
    %c0_60 = arith.constant 0 : index
    %135 = vector.load %arg12[%c0_59, %c0_60] : memref<3x1xf32, #tpu.memory_space<vmem>>, vector<3x1xf32>
    %136 = vector.broadcast %135 : vector<3x1xf32> to vector<3x8xf32>
    %137 = arith.addf %134, %136 : vector<3x8xf32>
    %c0_61 = arith.constant 0 : index
    %c0_62 = arith.constant 0 : index
    %138 = vector.load %arg18[%c0_61, %c0_62] : memref<3x8xf32, #tpu.memory_space<vmem>>, vector<3x8xf32>
    tpu.vector_store %arg18[%c0_61, %c0_62], %137 {strides = array<i32>} : memref<3x8xf32, #tpu.memory_space<vmem>>, vector<3x8xf32>,
    %c0_63 = arith.constant 0 : index
    %c0_64 = arith.constant 0 : index
    %c0_65 = arith.constant 0 : index
    %139 = vector.load %arg13[%c0_63, %c0_64, %c0_65] : memref<4x32x16xf32, #tpu.memory_space<vmem>>, vector<1x32x16xf32>
    %140 = vector.shape_cast %139 : vector<1x32x16xf32> to vector<32x16xf32>
    %141 = vector.extract_strided_slice %82 {offsets = [0, 0], sizes = [16, 8], strides = [1, 1]} : vector<16x32xf32> to vector<16x8xf32>
    %cst_66 = arith.constant dense<0.000000e+00> : vector<32x8xf32>
    %142 = tpu.matmul %140, %141, %cst_66 {dimension_numbers = #tpu.dot_dimension_numbers<[1], [0], [0], [1], [0, 0, 1, 1], [], []>} : vector<32x16xf32>, vector<16x8xf32>, vector<32x8xf32> -> vector<32x8xf32>
    %c1_67 = arith.constant 1 : index
    %c0_68 = arith.constant 0 : index
    %c0_69 = arith.constant 0 : index
    %143 = vector.load %arg13[%c1_67, %c0_68, %c0_69] : memref<4x32x16xf32, #tpu.memory_space<vmem>>, vector<1x32x16xf32>
    %144 = vector.shape_cast %143 : vector<1x32x16xf32> to vector<32x16xf32>
    %145 = vector.extract_strided_slice %82 {offsets = [0, 8], sizes = [16, 8], strides = [1, 1]} : vector<16x32xf32> to vector<16x8xf32>
    %cst_70 = arith.constant dense<0.000000e+00> : vector<32x8xf32>
    %146 = tpu.matmul %144, %145, %cst_70 {dimension_numbers = #tpu.dot_dimension_numbers<[1], [0], [0], [1], [0, 0, 1, 1], [], []>} : vector<32x16xf32>, vector<16x8xf32>, vector<32x8xf32> -> vector<32x8xf32>
    %147 = arith.addf %142, %146 : vector<32x8xf32>
    %c2_71 = arith.constant 2 : index
    %c0_72 = arith.constant 0 : index
    %c0_73 = arith.constant 0 : index
    %148 = vector.load %arg13[%c2_71, %c0_72, %c0_73] : memref<4x32x16xf32, #tpu.memory_space<vmem>>, vector<1x32x16xf32>
    %149 = vector.shape_cast %148 : vector<1x32x16xf32> to vector<32x16xf32>
    %150 = vector.extract_strided_slice %82 {offsets = [0, 16], sizes = [16, 8], strides = [1, 1]} : vector<16x32xf32> to vector<16x8xf32>
    %cst_74 = arith.constant dense<0.000000e+00> : vector<32x8xf32>
    %151 = tpu.matmul %149, %150, %cst_74 {dimension_numbers = #tpu.dot_dimension_numbers<[1], [0], [0], [1], [0, 0, 1, 1], [], []>} : vector<32x16xf32>, vector<16x8xf32>, vector<32x8xf32> -> vector<32x8xf32>
    %152 = arith.addf %147, %151 : vector<32x8xf32>
    %c3_75 = arith.constant 3 : index
    %c0_76 = arith.constant 0 : index
    %c0_77 = arith.constant 0 : index
    %153 = vector.load %arg13[%c3_75, %c0_76, %c0_77] : memref<4x32x16xf32, #tpu.memory_space<vmem>>, vector<1x32x16xf32>
    %154 = vector.shape_cast %153 : vector<1x32x16xf32> to vector<32x16xf32>
    %155 = vector.extract_strided_slice %82 {offsets = [0, 24], sizes = [16, 8], strides = [1, 1]} : vector<16x32xf32> to vector<16x8xf32>
    %cst_78 = arith.constant dense<0.000000e+00> : vector<32x8xf32>
    %156 = tpu.matmul %154, %155, %cst_78 {dimension_numbers = #tpu.dot_dimension_numbers<[1], [0], [0], [1], [0, 0, 1, 1], [], []>} : vector<32x16xf32>, vector<16x8xf32>, vector<32x8xf32> -> vector<32x8xf32>
    %157 = arith.addf %152, %156 : vector<32x8xf32>
    %c0_79 = arith.constant 0 : index
    %c0_80 = arith.constant 0 : index
    %158 = vector.load %arg14[%c0_79, %c0_80] : memref<32x1xf32, #tpu.memory_space<vmem>>, vector<32x1xf32>
    %c0_81 = arith.constant 0 : index
    %c0_82 = arith.constant 0 : index
    %159 = vector.load %arg15[%c0_81, %c0_82] : memref<32x1xf32, #tpu.memory_space<vmem>>, vector<32x1xf32>
    %cst_83 = arith.constant dense<0.000000e+00> : vector<32xf32>
    %160 = vector.multi_reduction <add>, %157, %cst_83 [1] : vector<32x8xf32> to vector<32xf32>
    %161 = vector.shape_cast %160 : vector<32xf32> to vector<32x1xf32>
    %cst_84 = arith.constant 1.250000e-01 : f32
    %162 = vector.broadcast %cst_84 : f32 to vector<32x1xf32>
    %163 = arith.mulf %161, %162 : vector<32x1xf32>
    %164 = arith.mulf %157, %157 : vector<32x8xf32>
    %cst_85 = arith.constant dense<0.000000e+00> : vector<32xf32>
    %165 = vector.multi_reduction <add>, %164, %cst_85 [1] : vector<32x8xf32> to vector<32xf32>
    %166 = vector.shape_cast %165 : vector<32xf32> to vector<32x1xf32>
    %cst_86 = arith.constant 1.250000e-01 : f32
    %167 = vector.broadcast %cst_86 : f32 to vector<32x1xf32>
    %168 = arith.mulf %166, %167 : vector<32x1xf32>
    %169 = arith.mulf %163, %163 : vector<32x1xf32>
    %170 = arith.subf %168, %169 : vector<32x1xf32>
    %cst_87 = arith.constant 0.000000e+00 : f32
    %171 = vector.broadcast %cst_87 : f32 to vector<32x1xf32>
    %172 = arith.maximumf %170, %171 : vector<32x1xf32>
    %173 = vector.broadcast %163 : vector<32x1xf32> to vector<32x8xf32>
    %174 = arith.subf %157, %173 : vector<32x8xf32>
    %175 = vector.broadcast %158 : vector<32x1xf32> to vector<32x8xf32>
    %176 = arith.mulf %175, %174 : vector<32x8xf32>
    %cst_88 = arith.constant 9.99999974E-6 : f32
    %177 = vector.broadcast %cst_88 : f32 to vector<32x1xf32>
    %178 = arith.addf %172, %177 : vector<32x1xf32>
    %179 = math.rsqrt %178 : vector<32x1xf32>
    %180 = vector.broadcast %179 : vector<32x1xf32> to vector<32x8xf32>
    %181 = arith.mulf %176, %180 : vector<32x8xf32>
    %182 = vector.broadcast %159 : vector<32x1xf32> to vector<32x8xf32>
    %183 = arith.addf %181, %182 : vector<32x8xf32>
    %cst_89 = arith.constant 0.000000e+00 : f32
    %184 = vector.broadcast %cst_89 : f32 to vector<32x8xf32>
    %185 = arith.cmpf oge, %183, %184 : vector<32x8xf32>
    %cst_90 = arith.constant 2.000000e-01 : f32
    %186 = vector.broadcast %cst_90 : f32 to vector<32x8xf32>
    %187 = arith.mulf %186, %183 : vector<32x8xf32>
    %188 = arith.select %185, %183, %187 : vector<32x8xi1>, vector<32x8xf32>
    %c0_91 = arith.constant 0 : index
    %c0_92 = arith.constant 0 : index
    %189 = vector.load %arg16[%c0_91, %c0_92] : memref<8x32xf32, #tpu.memory_space<vmem>>, vector<8x32xf32>
    %cst_93 = arith.constant dense<0.000000e+00> : vector<8x8xf32>
    %190 = tpu.matmul %189, %188, %cst_93 {dimension_numbers = #tpu.dot_dimension_numbers<[1], [0], [0], [1], [0, 0, 1, 1], [], []>} : vector<8x32xf32>, vector<32x8xf32>, vector<8x8xf32> -> vector<8x8xf32>
    %c0_94 = arith.constant 0 : index
    %c0_95 = arith.constant 0 : index
    %191 = vector.load %arg17[%c0_94, %c0_95] : memref<8x1xf32, #tpu.memory_space<vmem>>, vector<8x1xf32>
    %192 = vector.broadcast %191 : vector<8x1xf32> to vector<8x8xf32>
    %193 = arith.addf %190, %192 : vector<8x8xf32>
    %c0_96 = arith.constant 0 : index
    %c0_97 = arith.constant 0 : index
    %194 = vector.load %arg19[%c0_96, %c0_97] : memref<8x8xf32, #tpu.memory_space<vmem>>, vector<8x8xf32>
    tpu.vector_store %arg19[%c0_96, %c0_97], %193 {strides = array<i32>} : memref<8x8xf32, #tpu.memory_space<vmem>>, vector<8x8xf32>,
    return
  }
  func.func @transform_0(%arg0: i32) -> (i32, i32) {
    %c0_i32 = arith.constant 0 : i32
    %c0_i32_0 = arith.constant 0 : i32
    %c0_i32_1 = arith.constant 0 : i32
    return %c0_i32, %c0_i32_0 : i32, i32
  }
  func.func @transform_1(%arg0: i32) -> (i32, i32) {
    %c0_i32 = arith.constant 0 : i32
    %c0_i32_0 = arith.constant 0 : i32
    %c0_i32_1 = arith.constant 0 : i32
    return %c0_i32, %c0_i32_0 : i32, i32
  }
  func.func @transform_2(%arg0: i32) -> (i32, i32) {
    %c0_i32 = arith.constant 0 : i32
    %c0_i32_0 = arith.constant 0 : i32
    %c0_i32_1 = arith.constant 0 : i32
    return %c0_i32, %c0_i32_0 : i32, i32
  }
  func.func @transform_3(%arg0: i32) -> (i32, i32) {
    %c0_i32 = arith.constant 0 : i32
    %c0_i32_0 = arith.constant 0 : i32
    %c0_i32_1 = arith.constant 0 : i32
    return %c0_i32, %c0_i32_0 : i32, i32
  }
  func.func @transform_4(%arg0: i32) -> (i32, i32) {
    %c0_i32 = arith.constant 0 : i32
    %c0_i32_0 = arith.constant 0 : i32
    %c0_i32_1 = arith.constant 0 : i32
    return %c0_i32, %c0_i32_0 : i32, i32
  }
  func.func @transform_5(%arg0: i32) -> (i32, i32) {
    %c0_i32 = arith.constant 0 : i32
    %c0_i32_0 = arith.constant 0 : i32
    %c0_i32_1 = arith.constant 0 : i32
    return %c0_i32, %c0_i32_0 : i32, i32
  }
  func.func @transform_6(%arg0: i32) -> (i32, i32) {
    %c0_i32 = arith.constant 0 : i32
    %c0_i32_0 = arith.constant 0 : i32
    %c0_i32_1 = arith.constant 0 : i32
    return %c0_i32, %c0_i32_0 : i32, i32
  }
  func.func @transform_7(%arg0: i32) -> (i32, i32, i32) {
    %c0_i32 = arith.constant 0 : i32
    %c0_i32_0 = arith.constant 0 : i32
    %c0_i32_1 = arith.constant 0 : i32
    %c0_i32_2 = arith.constant 0 : i32
    return %c0_i32, %c0_i32_0, %c0_i32_1 : i32, i32, i32
  }
  func.func @transform_8(%arg0: i32) -> (i32, i32) {
    %c0_i32 = arith.constant 0 : i32
    %c0_i32_0 = arith.constant 0 : i32
    %c0_i32_1 = arith.constant 0 : i32
    return %c0_i32, %c0_i32_0 : i32, i32
  }
  func.func @transform_9(%arg0: i32) -> (i32, i32) {
    %c0_i32 = arith.constant 0 : i32
    %c0_i32_0 = arith.constant 0 : i32
    %c0_i32_1 = arith.constant 0 : i32
    return %c0_i32, %c0_i32_0 : i32, i32
  }
  func.func @transform_10(%arg0: i32) -> (i32, i32) {
    %c0_i32 = arith.constant 0 : i32
    %c0_i32_0 = arith.constant 0 : i32
    %c0_i32_1 = arith.constant 0 : i32
    return %c0_i32, %c0_i32_0 : i32, i32
  }
  func.func @transform_11(%arg0: i32) -> (i32, i32) {
    %c0_i32 = arith.constant 0 : i32
    %c0_i32_0 = arith.constant 0 : i32
    %c0_i32_1 = arith.constant 0 : i32
    return %c0_i32, %c0_i32_0 : i32, i32
  }
  func.func @transform_12(%arg0: i32) -> (i32, i32, i32) {
    %c0_i32 = arith.constant 0 : i32
    %c0_i32_0 = arith.constant 0 : i32
    %c0_i32_1 = arith.constant 0 : i32
    %c0_i32_2 = arith.constant 0 : i32
    return %c0_i32, %c0_i32_0, %c0_i32_1 : i32, i32, i32
  }
  func.func @transform_13(%arg0: i32) -> (i32, i32) {
    %c0_i32 = arith.constant 0 : i32
    %c0_i32_0 = arith.constant 0 : i32
    %c0_i32_1 = arith.constant 0 : i32
    return %c0_i32, %c0_i32_0 : i32, i32
  }
  func.func @transform_14(%arg0: i32) -> (i32, i32) {
    %c0_i32 = arith.constant 0 : i32
    %c0_i32_0 = arith.constant 0 : i32
    %c0_i32_1 = arith.constant 0 : i32
    return %c0_i32, %c0_i32_0 : i32, i32
  }
  func.func @transform_15(%arg0: i32) -> (i32, i32) {
    %c0_i32 = arith.constant 0 : i32
    %c0_i32_0 = arith.constant 0 : i32
    %c0_i32_1 = arith.constant 0 : i32
    return %c0_i32, %c0_i32_0 : i32, i32
  }
  func.func @transform_16(%arg0: i32) -> (i32, i32) {
    %c0_i32 = arith.constant 0 : i32
    %c0_i32_0 = arith.constant 0 : i32
    %c0_i32_1 = arith.constant 0 : i32
    return %c0_i32, %c0_i32_0 : i32, i32
  }
  func.func @transform_17(%arg0: i32) -> (i32, i32) {
    %c0_i32 = arith.constant 0 : i32
    %c0_i32_0 = arith.constant 0 : i32
    %c0_i32_1 = arith.constant 0 : i32
    return %c0_i32, %c0_i32_0 : i32, i32
  }
  func.func @transform_18(%arg0: i32) -> (i32, i32) {
    %c0_i32 = arith.constant 0 : i32
    %c0_i32_0 = arith.constant 0 : i32
    %c0_i32_1 = arith.constant 0 : i32
    return %c0_i32, %c0_i32_0 : i32, i32
  }
}

</mosaic_0001>

<bundles_post_ra>
// kernel: tpu_custom_call.1
= control target key start
LH: loop header
LB: loop body
LE: loop exit
PB: predicated region body
PF: predicated region fallthrough
CT: control target
= control target key end

     0   :  { %s2465_s0 = inlined_call_operand.vmem [shape: f32[16,64], index: 0, kind: input, shape index: {}]   ;;  %s2466_s1 = inlined_call_operand.vmem [shape: f32[8,16], index: 1, kind: input, shape index: {}]   ;;  %s2467_s2 = inlined_call_operand.vmem [shape: f32[8,1], index: 2, kind: input, shape index: {}]   ;;  %s2468_s3 = inlined_call_operand.vmem [shape: f32[8,1], index: 3, kind: input, shape index: {}]   ;;  %s2469_s4 = inlined_call_operand.vmem [shape: f32[16,32], index: 4, kind: input, shape index: {}]   ;;  %s2470_s5 = inlined_call_operand.vmem [shape: f32[16,1], index: 5, kind: input, shape index: {}]   ;;  %s2471_s6 = inlined_call_operand.vmem [shape: f32[16,1], index: 6, kind: input, shape index: {}]   ;;  %s2472_s7 = inlined_call_operand.vmem [shape: f32[4,32,16], index: 7, kind: input, shape index: {}]   ;;  %s2473_s8 = inlined_call_operand.vmem [shape: f32[32,1], index: 8, kind: input, shape index: {}]   ;;  %s2474_s9 = inlined_call_operand.vmem [shape: f32[32,1], index: 9, kind: input, shape index: {}]   ;;  %s2475_s10 = inlined_call_operand.vmem [shape: f32[3,32], index: 10, kind: input, shape index: {}]   ;;  %s2476_s11 = inlined_call_operand.vmem [shape: f32[3,1], index: 11, kind: input, shape index: {}]   ;;  %s2477_s12 = inlined_call_operand.vmem [shape: f32[4,32,16], index: 12, kind: input, shape index: {}]   ;;  %s2478_s13 = inlined_call_operand.vmem [shape: f32[32,1], index: 13, kind: input, shape index: {}]   ;;  %s2479_s14 = inlined_call_operand.vmem [shape: f32[32,1], index: 14, kind: input, shape index: {}]   ;;  %s2480_s15 = inlined_call_operand.vmem [shape: f32[8,32], index: 15, kind: input, shape index: {}]   ;;  %s2481_s16 = inlined_call_operand.vmem [shape: f32[8,1], index: 16, kind: input, shape index: {}]   ;;  %s2482_s17 = inlined_call_operand.hbm [shape: f32[3,8], index: 17, kind: output, shape index: {0}]   ;;  %s2483_s18 = inlined_call_operand.hbm [shape: f32[8,8], index: 18, kind: output, shape index: {1}]  }
   0x1   :  { %2485 = sst [smem:[#allocation8_spill]] %s2465_s0 }
   0x2   :  { %2486 = sst [smem:[#allocation9_spill]] %s2466_s1 }
   0x3   :  { %2487 = sst [smem:[#allocation10_spill]] %s2467_s2 }
   0x4   :  { %24 = vsyncpa [#allocation3], 0  ;;  %s2488_s29 = sld [smem:[#allocation8_spill]]  ;;  %v1986_v1 = vmov 0.0   ;;  %vm1987_vm0 = vmmov 0  }
   0x5   :  { %1788 = vmatprep.subr.mxu0 %v1986_v1  ;;  %1792 = vmatprep.mubr.msk.f32.mxu0 %vm1987_vm0, %v1986_v1 }
   0xa   :  { %v61_v0 = vld [vmem:[%s2488_s29 + $0x8] sm:$0xff]  ;;  %v60_v2 = vld [vmem:[%s2488_s29] sm:$0xff] }
   0xb   :  { %25 = vsyncpa [#allocation5], 0  ;;  %1789 = vmatpush3.msra.mxu0 %v61_v0  ;;  %s2489_s20 = sld [smem:[#allocation9_spill]]  ;;  %vm63_vm1 = vcmask 130048   ;;  %v1988_v5 = vmov 0   ;;  %v138_v6 = vld [vmem:[%s2468_s3] sm:$0xff] }
   0xc   :  { %1790 = vmatprep.subr.mxu0 %v1986_v1  ;;  %s2490_s2 = sld [smem:[#allocation10_spill]]  ;;  %1918 = vset.pattern.permute.xlu1 %v1988_v5  ;;  %vm139_vm2 = vcmask 523264   ;;  %s1989_s3 = smov 112   ;;  %vm181_vm4 = vcmask 64512   ;;  %v202_v29 = vld [vmem:[%s2469_s4] sm:$0xff]  ;;  %vm204_vm5 = vcmask 261120  }
   0xd   :  { %1791 = vmatpush3.msra.mxu0 %v60_v2  ;;  %1919 = vset.pattern.permute.xlu0 %v1988_v5  ;;  %s1990_s25 = smov 120   ;;  %s1991_s26 = smov 104   ;;  %vm184_vm6 = vcmask 195584   ;;  %vm1659_vm7 = vmneg %vm181_vm4  ;;  %v203_v42 = vld [vmem:[%s2469_s4 + $0x8] sm:$0xff]  ;;  %v286_v49 = vld [vmem:[%s2470_s5] sm:$0xff]  ;;  %vm999_vm14 = vcmask 59392  }
   0xe   :  { %s1992_s27 = smov 96   ;;  %1803 = vmatprep.mubr.msk.f32.mxu1 %vm204_vm5, %v202_v29  ;;  %s1993_s30 = smov 8   ;;  %v289_v50 = vld [vmem:[%s2471_s6 + $0x8] sm:$0xff]  ;;  %v288_v54 = vld [vmem:[%s2471_s6] sm:$0xff] }
   0xf   :  { %v287_v51 = vld [vmem:[%s2470_s5 + $0x8] sm:$0xff]  ;;  %v352_v0 = vld [vmem:[%s2472_s7] sm:$0xff] }
  0x10   :  { %v353_v29 = vld [vmem:[%s2472_s7 + $0x8] sm:$0xff] }
  0x11   :  { %v62_v3 = vld [vmem:[%s2489_s20] sm:$0xff] }
  0x12   :  { %1793 = vmatmul.mubr.msk.f32.vlgmr.msra.gmra.mxu0 %vm63_vm1, %v62_v3  ;;  %v137_v4 = vld [vmem:[%s2490_s2] sm:$0xff] }
  0x13   :  { %155 = vperm.xlu1 %1918, %v137_v4  }
  0x17   :  { %164 = vperm.xlu1 %1918, %v138_v6  }
  0x8e   :  { %v156_v21 = vpop.permute.xlu1 %155 }
  0x92   :  { %v165_v25 = vpop.permute.xlu1 %164 }
  0xd2   :  { %v133_v7 = vpop.f32.mrf.mxu0 }
  0xd3   :  { %v140_v8 = vsel %vm139_vm2, %v133_v7, 0.0  ;;  %v144_v9 = vmul.f32 %v133_v7, %v133_v7 }
  0xd4   :  { %141 = vadd.xlane.f32.xlu0 %v140_v8  ;;  %v1794_v10 = vpop.f32.mrf.mxu0 }
  0xd5   :  { %v145_v11 = vsel %vm139_vm2, %v144_v9, 0.0 }
  0xd8   :  { %146 = vadd.xlane.f32.xlu0 %v145_v11 }
 0x15d   :  { %v142_v12 = vpop.xlane.xlu0 %141 }
 0x15e   :  { %v143_v13 = vmul.f32 0.015625, %v142_v12  ;;  %v789_v12 = vld [vmem:[%s2473_s8 + $0x10] sm:$0xff] }
 0x160   :  { %v149_v15 = vmul.f32 %v143_v13, %v143_v13  ;;  %v152_v20 = vsub.f32 %v133_v7, %v143_v13 }
 0x161   :  { %v147_v14 = vpop.xlane.xlu0 %146 }
 0x162   :  { %v148_v16 = vmul.f32 0.015625, %v147_v14  ;;  %v158_v22 = vmul.f32 %v156_v21, %v152_v20  ;;  %v1663_v21 = vld [vmem:[%s2472_s7 + $0x20] sm:$0xff] }
 0x163   :  { %1810 = vmatprep.mubr.msk.f32.mxu0 %vm63_vm1, %v1663_v21 }
 0x164   :  { %v150_v17 = vsub.f32 %v148_v16, %v149_v15 }
 0x166   :  { %v151_v18 = vmax.f32 %v150_v17, 0.0 }
 0x168   :  { %v159_v19 = vadd.f32 1e-05, %v151_v18 }
 0x16a   :  { %1920 = vrsqrt.f32 %v159_v19 }
 0x177   :  { %v1921_v23 = vpop.eup %1920 }
 0x178   :  { %v161_v24 = vmul.f32 %v1921_v23, %v158_v22 }
 0x17a   :  { %v167_v26 = vadd.f32 %v165_v25, %v161_v24 }
 0x17c   :  { %vm168_vm3 = vcmp.ge.f32.partialorder %v167_v26, 0.0  ;;  %v169_v27 = vmul.f32 0.2, %v167_v26 }
 0x17e   :  { %v170_v28 = vsel %vm168_vm3, %v167_v26, %v169_v27 }
 0x17f   :  { %175 = vrot.lane.b32.xlu1 %v170_v28, %s1989_s3  ;;  %172 = vrot.lane.b32.xlu0 %v170_v28, %s1990_s25 }
 0x183   :  { %178 = vrot.lane.b32.xlu1 %v170_v28, %s1991_s26 }
 0x187   :  { %186 = vrot.lane.b32.xlu1 %v170_v28, %s1992_s27 }
 0x1f1   :  { %v176_v30 = vpop.permute.xlu1 %175  ;;  %v173_v31 = vpop.permute.xlu0 %172 }
 0x1f2   :  { %v182_v32 = vsel %vm181_vm4, %v170_v28, %v173_v31  ;;  %v189_v36 = vsel %vm181_vm4, %v173_v31, %v176_v30  ;;  %v355_v31 = vld [vmem:[%s2472_s7 + $0x18] sm:$0xff] }
 0x1f3   :  { %v183_v34 = vsel %vm63_vm1, %v182_v32, %v176_v30  ;;  %v354_v30 = vld [vmem:[%s2472_s7 + $0x10] sm:$0xff]  ;;  %v1683_v32 = vld [vmem:[%s2472_s7 + $0x60] sm:$0xff] }
 0x1f5   :  { %v179_v33 = vpop.permute.xlu1 %178 }
 0x1f6   :  { %v185_v35 = vsel %vm184_vm6, %v183_v34, %v179_v33  ;;  %v190_v37 = vsel %vm63_vm1, %v189_v36, %v179_v33  ;;  %v790_v33 = vld [vmem:[%s2473_s8 + $0x18] sm:$0xff]  ;;  %v788_v34 = vld [vmem:[%s2473_s8 + $0x8] sm:$0xff] }
 0x1f7   :  { %198 = vrot.lane.b32.xlu1 %v185_v35, %s1990_s25 }
 0x1f9   :  { %v187_v38 = vpop.permute.xlu1 %186 }
 0x1fa   :  { %v191_v39 = vsel %vm184_vm6, %v190_v37, %v187_v38 }
 0x1fb   :  { %193 = vrot.lane.b32.xlu1 %v191_v39, %s1993_s30 }
 0x269   :  { %v199_v40 = vpop.permute.xlu1 %198 }
 0x26a   :  { %1795 = vmatprep.subr.msk.mxu1 %vm184_vm6, %v199_v40 }
 0x26b   :  { %1796 = vmatpush3.msk.msra.mxu1 %vm184_vm6, %v199_v40  ;;  %v1665_v40 = vld [vmem:[%s2472_s7 + $0x30] sm:$0xff] }
 0x26c   :  { %1797 = vmatprep.subr.mxu1 %v191_v39 }
 0x26d   :  { %1798 = vmatpush3.msra.mxu1 %v191_v39  ;;  %v194_v41 = vpop.permute.xlu1 %193  ;;  %v1664_v39 = vld [vmem:[%s2472_s7 + $0x28] sm:$0xff] }
 0x26e   :  { %1799 = vmatprep.subr.msk.mxu1 %vm1659_vm7, %v194_v41 }
 0x26f   :  { %1800 = vmatpush3.msk.msra.mxu1 %vm1659_vm7, %v194_v41 }
 0x270   :  { %1801 = vmatprep.subr.mxu1 %v185_v35 }
 0x271   :  { %1802 = vmatpush3.msra.mxu1 %v185_v35  ;;  %v794_v35 = vld [vmem:[%s2474_s9 + $0x18] sm:$0xff] }
 0x272   :  { %1804 = vmatmul.mubr.msk.f32.vlgmr.msra.gmra.mxu1 %vm204_vm5, %v203_v42  ;;  %v1666_v42 = vld [vmem:[%s2472_s7 + $0x38] sm:$0xff] }
 0x273   :  { %1820 = vmatprep.mubr.msk.f32.mxu1 %vm63_vm1, %v352_v0 }
 0x332   :  { %v1805_v43 = vpop.f32.mrf.mxu1 }
 0x333   :  { %v293_v44 = vsel %vm204_vm5, %v1805_v43, 0.0  ;;  %v299_v47 = vmul.f32 %v1805_v43, %v1805_v43 }
 0x334   :  { %294 = vadd.xlane.f32.xlu1 %v293_v44  ;;  %v277_v45 = vpop.f32.mrf.mxu1 }
 0x335   :  { %v290_v46 = vsel %vm204_vm5, %v277_v45, 0.0  ;;  %v303_v48 = vsel %vm204_vm5, %v299_v47, 0.0  ;;  %v298_v52 = vmul.f32 %v277_v45, %v277_v45 }
 0x336   :  { %291 = vadd.xlane.f32.xlu0 %v290_v46  ;;  %v1677_v46 = vld [vmem:[%s2472_s7 + $0x50] sm:$0xff] }
 0x337   :  { %v300_v53 = vsel %vm204_vm5, %v298_v52, 0.0  ;;  %v1001_v52 = vld [vmem:[%s2477_s12] sm:$0xff] }
 0x33a   :  { %304 = vadd.xlane.f32.xlu0 %v303_v48  ;;  %v1678_v48 = vld [vmem:[%s2472_s7 + $0x58] sm:$0xff] }
 0x345   :  { %318 = vperm.xlu1 %1918, %v286_v49   ;;  %v1684_v49 = vld [vmem:[%s2472_s7 + $0x68] sm:$0xff] }
 0x349   :  { %341 = vperm.xlu1 %1918, %v289_v50   ;;  %v1685_v50 = vld [vmem:[%s2472_s7 + $0x70] sm:$0xff] }
 0x350   :  { %323 = vperm.xlu0 %1919, %v287_v51   ;;  %v1686_v51 = vld [vmem:[%s2472_s7 + $0x78] sm:$0xff] }
 0x36d   :  { %301 = vadd.xlane.f32.xlu1 %v300_v53  ;;  %v1002_v53 = vld [vmem:[%s2477_s12 + $0x8] sm:$0xff] }
 0x37e   :  { %336 = vperm.xlu1 %1918, %v288_v54  }
 0x3bd   :  { %v295_v55 = vpop.xlane.xlu1 %294 }
 0x3be   :  { %v297_v57 = vmul.f32 0.03125, %v295_v55 }
 0x3bf   :  { %v292_v56 = vpop.xlane.xlu0 %291 }
 0x3c0   :  { %v309_v59 = vmul.f32 %v297_v57, %v297_v57  ;;  %v315_v4 = vsub.f32 %v1805_v43, %v297_v57  ;;  %v296_v13 = vmul.f32 0.03125, %v292_v56  ;;  %v1675_v43 = vld [vmem:[%s2472_s7 + $0x40] sm:$0xff] }
 0x3c1   :  { %v319_v2 = vpop.permute.xlu1 %318 }
 0x3c2   :  { %v308_v15 = vmul.f32 %v296_v13, %v296_v13  ;;  %v314_v20 = vsub.f32 %v277_v45, %v296_v13  ;;  %v1676_v45 = vld [vmem:[%s2472_s7 + $0x48] sm:$0xff] }
 0x3c3   :  { %v305_v58 = vpop.xlane.xlu0 %304 }
 0x3c4   :  { %v307_v60 = vmul.f32 0.03125, %v305_v58  ;;  %v326_v22 = vmul.f32 %v319_v2, %v314_v20 }
 0x3c5   :  { %v342_v8 = vpop.permute.xlu1 %341 }
 0x3c6   :  { %v311_v61 = vsub.f32 %v307_v60, %v309_v59 }
 0x3c8   :  { %v313_v62 = vmax.f32 %v311_v61, 0.0 }
 0x3ca   :  { %v329_v63 = vadd.f32 1e-05, %v313_v62 }
 0x3cb   :  { %v324_v3 = vpop.permute.xlu0 %323 }
 0x3cc   :  { %1922 = vrsqrt.f32 %v329_v63  ;;  %v327_v5 = vmul.f32 %v324_v3, %v315_v4 }
 0x3d9   :  { %v1923_v6 = vpop.eup %1922 }
 0x3da   :  { %v333_v7 = vmul.f32 %v1923_v6, %v327_v5 }
 0x3dc   :  { %v345_v9 = vadd.f32 %v342_v8, %v333_v7 }
 0x3de   :  { %vm347_vm8 = vcmp.ge.f32.partialorder %v345_v9, 0.0  ;;  %v349_v10 = vmul.f32 0.2, %v345_v9 }
 0x3e0   :  { %v2148_v11 = vsel %vm347_vm8, %v345_v9, %v349_v10 }
 0x3e1   :  { %682 = vrot.lane.b32.xlu0 %v2148_v11, %s1991_s26  ;;  %365 = vrot.lane.b32.xlu1 %v2148_v11, %s1990_s25 }
 0x3e2   :  { %1816 = vmatprep.subr.mxu1 %v2148_v11 }
 0x3e3   :  { %1817 = vmatpush3.msra.mxu1 %v2148_v11 }
 0x3e5   :  { %859 = vperm.xlu0 %1919, %v789_v12  }
 0x3f6   :  { %v302_v14 = vpop.xlane.xlu1 %301 }
 0x3f7   :  { %v306_v16 = vmul.f32 0.03125, %v302_v14 }
 0x3f9   :  { %v310_v17 = vsub.f32 %v306_v16, %v308_v15 }
 0x3fa   :  { %v337_v25 = vpop.permute.xlu1 %336 }
 0x3fb   :  { %v312_v18 = vmax.f32 %v310_v17, 0.0 }
 0x3fd   :  { %v328_v19 = vadd.f32 1e-05, %v312_v18 }
 0x3ff   :  { %1924 = vrsqrt.f32 %v328_v19 }
 0x40c   :  { %v1925_v23 = vpop.eup %1924 }
 0x40d   :  { %v332_v24 = vmul.f32 %v1925_v23, %v326_v22 }
 0x40f   :  { %v344_v26 = vadd.f32 %v337_v25, %v332_v24 }
 0x411   :  { %vm346_vm9 = vcmp.ge.f32.partialorder %v344_v26, 0.0  ;;  %v348_v27 = vmul.f32 0.2, %v344_v26 }
 0x413   :  { %v2163_v28 = vsel %vm346_vm9, %v344_v26, %v348_v27 }
 0x414   :  { %363 = vrot.lane.b32.xlu1 %v2163_v28, %s1990_s25  ;;  %1818 = vmatprep.subr.mxu1 %v2163_v28 }
 0x415   :  { %1819 = vmatpush3.msra.mxu1 %v2163_v28 }
 0x416   :  { %1821 = vmatmul.mubr.msk.f32.vlgmr.msra.gmra.mxu1 %vm63_vm1, %v353_v29  ;;  %v793_v29 = vld [vmem:[%s2474_s9 + $0x10] sm:$0xff] }
 0x417   :  { %1823 = vmatprep.mubr.msk.f32.mxu1 %vm63_vm1, %v354_v30  ;;  %v787_v30 = vld [vmem:[%s2473_s8] sm:$0xff] }
 0x418   :  { %570 = vrot.lane.b32.xlu1 %v2148_v11, %s1989_s3 }
 0x41a   :  { %1824 = vmatmul.mubr.msk.f32.gmra.mxu1 %vm63_vm1, %v355_v31  ;;  %v792_v31 = vld [vmem:[%s2474_s9 + $0x8] sm:$0xff] }
 0x41b   :  { %1840 = vmatprep.mubr.msk.f32.mxu1 %vm63_vm1, %v1683_v32  ;;  %v1418_v32 = vld [vmem:[%s2478_s13 + $0x10] sm:$0xff] }
 0x41c   :  { %568 = vrot.lane.b32.xlu1 %v2163_v28, %s1989_s3 }
 0x420   :  { %680 = vrot.lane.b32.xlu1 %v2163_v28, %s1991_s26 }
 0x424   :  { %864 = vperm.xlu1 %1918, %v790_v33  }
 0x428   :  { %854 = vperm.xlu1 %1918, %v788_v34  }
 0x42c   :  { %900 = vperm.xlu1 %1918, %v794_v35   ;;  %v791_v35 = vld [vmem:[%s2474_s9] sm:$0xff] }
 0x453   :  { %v683_v36 = vpop.permute.xlu0 %682  ;;  %v2200_v37 = vpop.permute.xlu1 %365 }
 0x454   :  { %1806 = vmatprep.subr.mxu0 %v2200_v37  ;;  %1836 = vmatprep.subr.mxu1 %v683_v36 }
 0x455   :  { %1807 = vmatpush3.msra.mxu0 %v2200_v37  ;;  %1837 = vmatpush3.msra.mxu1 %v683_v36 }
 0x486   :  { %v2204_v38 = vpop.permute.xlu1 %363 }
 0x487   :  { %1808 = vmatprep.subr.mxu0 %v2204_v38 }
 0x488   :  { %1809 = vmatpush3.msra.mxu0 %v2204_v38 }
 0x489   :  { %1811 = vmatmul.mubr.msk.f32.vlgmr.msra.gmra.mxu0 %vm63_vm1, %v1664_v39  ;;  %v1417_v39 = vld [vmem:[%s2478_s13 + $0x8] sm:$0xff] }
 0x48a   :  { %v2215_v41 = vpop.permute.xlu1 %570  ;;  %1813 = vmatprep.mubr.msk.f32.mxu0 %vm63_vm1, %v1665_v40  ;;  %v1423_v40 = vld [vmem:[%s2479_s14 + $0x18] sm:$0xff] }
 0x48b   :  { %1826 = vmatprep.subr.mxu0 %v2215_v41 }
 0x48c   :  { %1827 = vmatpush3.msra.mxu0 %v2215_v41 }
 0x48d   :  { %1814 = vmatmul.mubr.msk.f32.gmra.mxu0 %vm63_vm1, %v1666_v42  ;;  %v1003_v42 = vld [vmem:[%s2477_s12 + $0x10] sm:$0xff] }
 0x48e   :  { %v2227_v44 = vpop.permute.xlu1 %568  ;;  %1830 = vmatprep.mubr.msk.f32.mxu0 %vm63_vm1, %v1675_v43  ;;  %v1004_v43 = vld [vmem:[%s2477_s12 + $0x18] sm:$0xff] }
 0x48f   :  { %1828 = vmatprep.subr.mxu0 %v2227_v44 }
 0x490   :  { %1829 = vmatpush3.msra.mxu0 %v2227_v44 }
 0x491   :  { %1831 = vmatmul.mubr.msk.f32.vlgmr.msra.gmra.mxu0 %vm63_vm1, %v1676_v45  ;;  %1846 = vmatprep.subr.mxu0 %v1986_v1  ;;  %v1712_v45 = vld [vmem:[%s2477_s12 + $0x60] sm:$0xff] }
 0x492   :  { %v681_v47 = vpop.permute.xlu1 %680  ;;  %1833 = vmatprep.mubr.msk.f32.mxu0 %vm63_vm1, %v1677_v46  ;;  %v1713_v46 = vld [vmem:[%s2477_s12 + $0x68] sm:$0xff] }
 0x493   :  { %1838 = vmatprep.subr.mxu1 %v681_v47 }
 0x494   :  { %1839 = vmatpush3.msra.mxu1 %v681_v47 }
 0x495   :  { %1834 = vmatmul.mubr.msk.f32.gmra.mxu0 %vm63_vm1, %v1678_v48  ;;  %1841 = vmatmul.mubr.msk.f32.vlgmr.msra.gmra.mxu1 %vm63_vm1, %v1684_v49  ;;  %v1715_v48 = vld [vmem:[%s2477_s12 + $0x78] sm:$0xff]  ;;  %v860_v49 = vpop.permute.xlu0 %859 }
 0x496   :  { %1867 = vmatprep.subr.mxu1 %v2148_v11  ;;  %1843 = vmatprep.mubr.msk.f32.mxu1 %vm63_vm1, %v1685_v50 }
 0x497   :  { %1868 = vmatpush3.msra.mxu1 %v2148_v11  ;;  %1854 = vmatprep.mubr.msk.f32.mxu0 %vm1987_vm0, %v1986_v1 }
 0x498   :  { %1869 = vmatprep.subr.mxu1 %v2163_v28 }
 0x499   :  { %1870 = vmatpush3.msra.mxu1 %v2163_v28 }
 0x49a   :  { %1844 = vmatmul.mubr.msk.f32.gmra.mxu1 %vm63_vm1, %v1686_v51  ;;  %1887 = vmatprep.subr.mxu1 %v683_v36 }
 0x49b   :  { %1871 = vmatprep.mubr.msk.f32.mxu1 %vm63_vm1, %v1001_v52 }
 0x49e   :  { %1872 = vmatmul.mubr.msk.f32.vlgmr.msra.gmra.mxu1 %vm63_vm1, %v1002_v53 }
 0x49f   :  { %1888 = vmatpush3.msra.mxu1 %v683_v36  ;;  %v1419_v36 = vld [vmem:[%s2478_s13 + $0x18] sm:$0xff]  ;;  %1874 = vmatprep.mubr.msk.f32.mxu1 %vm63_vm1, %v1003_v42 }
 0x4a0   :  { %1889 = vmatprep.subr.mxu1 %v681_v47 }
 0x4a1   :  { %1890 = vmatpush3.msra.mxu1 %v681_v47  ;;  %v1714_v47 = vld [vmem:[%s2477_s12 + $0x70] sm:$0xff] }
 0x4a2   :  { %1875 = vmatmul.mubr.msk.f32.gmra.mxu1 %vm63_vm1, %v1004_v43 }
 0x4a3   :  { %1891 = vmatprep.mubr.msk.f32.mxu1 %vm63_vm1, %v1712_v45 }
 0x4a6   :  { %1892 = vmatmul.mubr.msk.f32.vlgmr.msra.gmra.mxu1 %vm63_vm1, %v1713_v46 }
 0x4a7   :  { %1894 = vmatprep.mubr.msk.f32.mxu1 %vm63_vm1, %v1714_v47 }
 0x4aa   :  { %1895 = vmatmul.mubr.msk.f32.gmra.mxu1 %vm63_vm1, %v1715_v48 }
 0x4d6   :  { %v1822_v54 = vpop.f32.mrf.mxu1 }
 0x4d8   :  { %v544_v57 = vpop.f32.mrf.mxu1 }
 0x4da   :  { %v1825_v60 = vpop.f32.mrf.mxu1 }
 0x4dc   :  { %v554_v63 = vpop.f32.mrf.mxu1 }
 0x549   :  { %v1812_v55 = vpop.f32.mrf.mxu0 }
 0x54a   :  { %v550_v62 = vadd.f32 %v1822_v54, %v1812_v55 }
 0x54b   :  { %v447_v56 = vpop.f32.mrf.mxu0 }
 0x54c   :  { %v545_v2 = vadd.f32 %v544_v57, %v447_v56 }
 0x54d   :  { %v1815_v58 = vpop.f32.mrf.mxu0 }
 0x54e   :  { %v560_v9 = vadd.f32 %v1825_v60, %v1815_v58 }
 0x54f   :  { %v457_v59 = vpop.f32.mrf.mxu0 }
 0x550   :  { %v555_v14 = vadd.f32 %v554_v63, %v457_v59 }
 0x551   :  { %v1832_v61 = vpop.f32.mrf.mxu0 }
 0x552   :  { %v672_v3 = vadd.f32 %v1832_v61, %v550_v62  ;;  %v865_v61 = vpop.permute.xlu1 %864 }
 0x553   :  { %v652_v0 = vpop.f32.mrf.mxu0 }
 0x554   :  { %v671_v6 = vadd.f32 %v652_v0, %v545_v2 }
 0x555   :  { %v1835_v4 = vpop.f32.mrf.mxu0  ;;  %v1842_v5 = vpop.f32.mrf.mxu1 }
 0x556   :  { %v2271_v7 = vadd.f32 %v1842_v5, %v672_v3  ;;  %v674_v15 = vadd.f32 %v1835_v4, %v560_v9  ;;  %v855_v63 = vpop.permute.xlu1 %854 }
 0x557   :  { %v764_v8 = vpop.f32.mrf.mxu1  ;;  %v662_v10 = vpop.f32.mrf.mxu0 }
 0x558   :  { %v2273_v11 = vadd.f32 %v764_v8, %v671_v6  ;;  %v798_v12 = vsel %vm181_vm4, %v2271_v7, 0.0  ;;  %v812_v13 = vmul.f32 %v2271_v7, %v2271_v7  ;;  %v673_v18 = vadd.f32 %v662_v10, %v555_v14 }
 0x559   :  { %799 = vadd.xlane.f32.xlu0 %v798_v12 }
 0x55a   :  { %v1845_v16 = vpop.f32.mrf.mxu1  ;;  %v818_v17 = vsel %vm181_vm4, %v812_v13, 0.0  ;;  %v795_v21 = vsel %vm181_vm4, %v2273_v11, 0.0  ;;  %v811_v25 = vmul.f32 %v2273_v11, %v2273_v11  ;;  %v901_v4 = vpop.permute.xlu1 %900 }
 0x55b   :  { %819 = vadd.xlane.f32.xlu1 %v818_v17  ;;  %v2280_v19 = vadd.f32 %v1845_v16, %v674_v15 }
 0x55c   :  { %v774_v20 = vpop.f32.mrf.mxu1  ;;  %v815_v26 = vsel %vm181_vm4, %v811_v25, 0.0 }
 0x55d   :  { %v2284_v22 = vadd.f32 %v774_v20, %v673_v18  ;;  %796 = vadd.xlane.f32.xlu0 %v795_v21  ;;  %v804_v24 = vsel %vm181_vm4, %v2280_v19, 0.0  ;;  %v814_v27 = vmul.f32 %v2280_v19, %v2280_v19 }
 0x55f   :  { %v801_v23 = vsel %vm181_vm4, %v2284_v22, 0.0  ;;  %v824_v28 = vsel %vm181_vm4, %v814_v27, 0.0  ;;  %v813_v33 = vmul.f32 %v2284_v22, %v2284_v22 }
 0x560   :  { %802 = vadd.xlane.f32.xlu1 %v801_v23 }
 0x561   :  { %805 = vadd.xlane.f32.xlu0 %v804_v24  ;;  %v821_v34 = vsel %vm181_vm4, %v813_v33, 0.0 }
 0x565   :  { %816 = vadd.xlane.f32.xlu0 %v815_v26 }
 0x569   :  { %825 = vadd.xlane.f32.xlu0 %v824_v28 }
 0x571   :  { %895 = vperm.xlu1 %1918, %v793_v29  }
 0x57f   :  { %849 = vperm.xlu0 %1919, %v787_v30  }
 0x583   :  { %890 = vperm.xlu0 %1919, %v792_v31  }
 0x587   :  { %1488 = vperm.xlu0 %1919, %v1418_v32  }
 0x595   :  { %822 = vadd.xlane.f32.xlu1 %v821_v34 }
 0x5a6   :  { %885 = vperm.xlu1 %1918, %v791_v35  }
 0x5aa   :  { %1493 = vperm.xlu1 %1918, %v1419_v36  }
 0x5ae   :  { %1483 = vperm.xlu1 %1918, %v1417_v39  }
 0x5b2   :  { %1529 = vperm.xlu1 %1918, %v1423_v40  }
 0x5e2   :  { %v800_v50 = vpop.xlane.xlu0 %799 }
 0x5e3   :  { %v808_v9 = vmul.f32 0.125, %v800_v50 }
 0x5e4   :  { %v820_v8 = vpop.xlane.xlu1 %819 }
 0x5e5   :  { %v832_v12 = vmul.f32 %v808_v9, %v808_v9  ;;  %v828_v13 = vmul.f32 0.125, %v820_v8  ;;  %v844_v34 = vsub.f32 %v2271_v7, %v808_v9 }
 0x5e6   :  { %v797_v51 = vpop.xlane.xlu0 %796 }
 0x5e7   :  { %v807_v14 = vmul.f32 0.125, %v797_v51  ;;  %v836_v17 = vsub.f32 %v828_v13, %v832_v12  ;;  %v868_v40 = vmul.f32 %v855_v63, %v844_v34  ;;  %v1873_v63 = vpop.f32.mrf.mxu1 }
 0x5e9   :  { %v803_v15 = vpop.xlane.xlu1 %802  ;;  %v831_v18 = vmul.f32 %v807_v14, %v807_v14  ;;  %v840_v21 = vmax.f32 %v836_v17, 0.0  ;;  %v843_v39 = vsub.f32 %v2273_v11, %v807_v14 }
 0x5ea   :  { %v806_v52 = vpop.xlane.xlu0 %805  ;;  %v809_v23 = vmul.f32 0.125, %v803_v15 }
 0x5eb   :  { %v810_v54 = vmul.f32 0.125, %v806_v52  ;;  %v872_v26 = vadd.f32 1e-05, %v840_v21 }
 0x5ec   :  { %v833_v27 = vmul.f32 %v809_v23, %v809_v23  ;;  %v845_v35 = vsub.f32 %v2284_v22, %v809_v23 }
 0x5ed   :  { %v834_v56 = vmul.f32 %v810_v54, %v810_v54  ;;  %v846_v62 = vsub.f32 %v2280_v19, %v810_v54  ;;  %v896_v20 = vpop.permute.xlu1 %895 }
 0x5ee   :  { %v817_v53 = vpop.xlane.xlu0 %816  ;;  %v869_v45 = vmul.f32 %v860_v49, %v845_v35  ;;  %v919_v49 = vld [vmem:[%s2475_s10] sm:$0x7] }
 0x5ef   :  { %v870_v0 = vmul.f32 %v865_v61, %v846_v62  ;;  %v827_v16 = vmul.f32 0.125, %v817_v53  ;;  %v1694_v61 = vld [vmem:[%s2477_s12 + $0x30] sm:$0xff]  ;;  %v1704_v62 = vld [vmem:[%s2477_s12 + $0x40] sm:$0xff] }
 0x5f1   :  { %v835_v19 = vsub.f32 %v827_v16, %v831_v18 }
 0x5f2   :  { %v826_v55 = vpop.xlane.xlu0 %825 }
 0x5f3   :  { %v830_v57 = vmul.f32 0.125, %v826_v55  ;;  %v839_v24 = vmax.f32 %v835_v19, 0.0 }
 0x5f5   :  { %v838_v58 = vsub.f32 %v830_v57, %v834_v56  ;;  %v871_v29 = vadd.f32 1e-05, %v839_v24 }
 0x5f7   :  { %v842_v59 = vmax.f32 %v838_v58, 0.0 }
 0x5f9   :  { %v874_v60 = vadd.f32 1e-05, %v842_v59  ;;  %v1692_v59 = vld [vmem:[%s2477_s12 + $0x20] sm:$0xff] }
 0x5fa   :  { %v850_v33 = vpop.permute.xlu0 %849 }
 0x5fb   :  { %1926 = vrsqrt.f32 %v874_v60  ;;  %v867_v46 = vmul.f32 %v850_v33, %v843_v39  ;;  %v1693_v60 = vld [vmem:[%s2477_s12 + $0x28] sm:$0xff] }
 0x5fc   :  { %1928 = vrsqrt.f32 %v872_v26 }
 0x5fd   :  { %1930 = vrsqrt.f32 %v871_v29 }
 0x5fe   :  { %v891_v43 = vpop.permute.xlu0 %890 }
 0x608   :  { %v1927_v2 = vpop.eup %1926 }
 0x609   :  { %v882_v3 = vmul.f32 %v1927_v2, %v870_v0  ;;  %v1929_v36 = vpop.eup %1928  ;;  %v1185_v0 = vpop.f32.mrf.mxu1 }
 0x60a   :  { %v1931_v42 = vpop.eup %1930  ;;  %v880_v47 = vmul.f32 %v1929_v36, %v868_v40 }
 0x60b   :  { %v906_v5 = vadd.f32 %v901_v4, %v882_v3  ;;  %v879_v52 = vmul.f32 %v1931_v42, %v867_v46  ;;  %v1876_v3 = vpop.f32.mrf.mxu1 }
 0x60c   :  { %v904_v51 = vadd.f32 %v891_v43, %v880_v47  ;;  %v1422_v47 = vld [vmem:[%s2479_s14 + $0x10] sm:$0xff] }
 0x60d   :  { %vm910_vm10 = vcmp.ge.f32.partialorder %v906_v5, 0.0  ;;  %v914_v6 = vmul.f32 0.2, %v906_v5 }
 0x60e   :  { %v912_v56 = vmul.f32 0.2, %v904_v51  ;;  %vm908_vm12 = vcmp.ge.f32.partialorder %v904_v51, 0.0 }
 0x60f   :  { %v918_v10 = vsel %vm910_vm10, %v906_v5, %v914_v6  ;;  %v1195_v6 = vpop.f32.mrf.mxu1 }
 0x610   :  { %1847 = vmatpush3.msra.mxu0 %v918_v10  ;;  %v916_v11 = vsel %vm908_vm12, %v904_v51, %v912_v56  ;;  %v920_v51 = vld [vmem:[%s2476_s11] sm:$0x7]  ;;  %v2444_v56 = vpop.permute.xlu0 %1488 }
 0x611   :  { %1848 = vmatprep.subr.mxu0 %v1986_v1  ;;  %v1893_v10 = vpop.f32.mrf.mxu1 }
 0x613   :  { %v1393_v15 = vpop.f32.mrf.mxu1 }
 0x61e   :  { %v823_v25 = vpop.xlane.xlu1 %822 }
 0x61f   :  { %v829_v28 = vmul.f32 0.125, %v823_v25  ;;  %v1896_v25 = vpop.f32.mrf.mxu1 }
 0x621   :  { %v837_v30 = vsub.f32 %v829_v28, %v833_v27  ;;  %v1403_v33 = vpop.f32.mrf.mxu1 }
 0x622   :  { %v886_v50 = vpop.permute.xlu1 %885 }
 0x623   :  { %v841_v31 = vmax.f32 %v837_v30, 0.0  ;;  %v903_v54 = vadd.f32 %v886_v50, %v879_v52  ;;  %v1421_v50 = vld [vmem:[%s2479_s14 + $0x8] sm:$0xff] }
 0x625   :  { %v873_v32 = vadd.f32 1e-05, %v841_v31  ;;  %v911_v22 = vmul.f32 0.2, %v903_v54  ;;  %vm907_vm13 = vcmp.ge.f32.partialorder %v903_v54, 0.0 }
 0x627   :  { %1932 = vrsqrt.f32 %v873_v32  ;;  %v915_v58 = vsel %vm907_vm13, %v903_v54, %v911_v22  ;;  %v1420_v54 = vld [vmem:[%s2479_s14] sm:$0xff] }
 0x634   :  { %v1933_v48 = vpop.eup %1932 }
 0x635   :  { %v881_v53 = vmul.f32 %v1933_v48, %v869_v45  ;;  %v1416_v48 = vld [vmem:[%s2478_s13] sm:$0xff] }
 0x637   :  { %v905_v55 = vadd.f32 %v896_v20, %v881_v53 }
 0x639   :  { %vm909_vm11 = vcmp.ge.f32.partialorder %v905_v55, 0.0  ;;  %v913_v7 = vmul.f32 0.2, %v905_v55 }
 0x63b   :  { %v917_v57 = vsel %vm909_vm11, %v905_v55, %v913_v7  ;;  %v1549_v55 = vld [vmem:[%s2481_s16] sm:$0xff]  ;;  %s1994_s16 = smov [#allocation2]  }
 0x63c   :  { %1849 = vmatpush3.msra.mxu0 %v917_v57  ;;  %s1635_s23 = sshll.u32 %s1994_s16, 4  ;;  %s1636_s23 = int_to_ptr.vmem [resolvable:$true] %s1635_s23 }
 0x63d   :  { %1850 = vmatprep.subr.mxu0 %v1986_v1  ;;  %s1942_s10 = scalar_lea.vmem %s1636_s23, 64  ;;  %p1947_p1 = scmp.lt.s32.totalorder %s1636_s23, %s1636_s23 }
 0x63e   :  { %1851 = vmatpush3.msra.mxu0 %v916_v11  ;;  %p1943_p0 = scmp.ne.s32.totalorder %s1636_s23, %s1942_s10  ;;  %p1948_p2 = scmp.lt.s32.totalorder %s1942_s10, %s1942_s10 }
 0x63f   :  { %1852 = vmatprep.subr.mxu0 %v1986_v1 }
 0x640   :  { %1853 = vmatpush3.msra.mxu0 %v915_v58  ;;  %p1949_p3 = por %p1948_p2, %p1947_p1 }
 0x641   :  { %1855 = vmatmul.mubr.msk.f32.vlgmr.msra.gmra.mxu0 %vm204_vm5, %v919_v49  ;;  %1857 = vmatprep.subr.mxu0 %v2200_v37 }
 0x642   :  { %1858 = vmatpush3.msra.mxu0 %v2200_v37  ;;  %1861 = vmatprep.mubr.msk.f32.mxu0 %vm63_vm1, %v1692_v59  ;;  %v1695_v37 = vld [vmem:[%s2477_s12 + $0x38] sm:$0xff]  ;;  %p1950_p4 = pnand %p1949_p3, %p1943_p0 }
 0x643   :  { %1859 = vmatprep.subr.mxu0 %v2204_v38 }
 0x644   :  { %1860 = vmatpush3.msra.mxu0 %v2204_v38  ;;  %v1705_v38 = vld [vmem:[%s2477_s12 + $0x48] sm:$0xff] }
 0x645   :  { %1862 = vmatmul.mubr.msk.f32.vlgmr.msra.gmra.mxu0 %vm63_vm1, %v1693_v60  ;;  %1877 = vmatprep.subr.mxu0 %v2215_v41 }
 0x646   :  { %1878 = vmatpush3.msra.mxu0 %v2215_v41  ;;  %1864 = vmatprep.mubr.msk.f32.mxu0 %vm63_vm1, %v1694_v61  ;;  %v1706_v41 = vld [vmem:[%s2477_s12 + $0x50] sm:$0xff] }
 0x647   :  { %1879 = vmatprep.subr.mxu0 %v2227_v44 }
 0x648   :  { %1880 = vmatpush3.msra.mxu0 %v2227_v44  ;;  %v1707_v44 = vld [vmem:[%s2477_s12 + $0x58] sm:$0xff] }
 0x649   :  { %1865 = vmatmul.mubr.msk.f32.gmra.mxu0 %vm63_vm1, %v1695_v37  ;;  %1897 = vmatprep.subr.mxu0 %v1986_v1 }
 0x64a   :  { %1881 = vmatprep.mubr.msk.f32.mxu0 %vm63_vm1, %v1704_v62 }
 0x64d   :  { %1882 = vmatmul.mubr.msk.f32.vlgmr.msra.gmra.mxu0 %vm63_vm1, %v1705_v38 }
 0x64e   :  { %1884 = vmatprep.mubr.msk.f32.mxu0 %vm63_vm1, %v1706_v41  ;;  %v1494_v41 = vpop.permute.xlu1 %1493 }
 0x651   :  { %1885 = vmatmul.mubr.msk.f32.gmra.mxu0 %vm63_vm1, %v1707_v44 }
 0x652   :  { %1905 = vmatprep.mubr.msk.f32.mxu0 %vm1987_vm0, %v1986_v1 }
 0x701   :  { %v2401_v2 = vpop.f32.mrf.mxu0 }
 0x703   :  { %v1856_v4 = vpop.f32.mrf.mxu0 }
 0x705   :  { %v1863_v5 = vpop.f32.mrf.mxu0 }
 0x706   :  { %v1191_v13 = vadd.f32 %v1873_v63, %v1863_v5 }
 0x707   :  { %v1088_v8 = vpop.f32.mrf.mxu0 }
 0x708   :  { %v1186_v16 = vadd.f32 %v1185_v0, %v1088_v8  ;;  %v1484_v0 = vpop.permute.xlu1 %1483 }
 0x709   :  { %v1866_v9 = vpop.f32.mrf.mxu0 }
 0x70a   :  { %v1201_v19 = vadd.f32 %v1876_v3, %v1866_v9 }
 0x70b   :  { %v1098_v12 = vpop.f32.mrf.mxu0 }
 0x70c   :  { %v1196_v23 = vadd.f32 %v1195_v6, %v1098_v12  ;;  %v1530_v8 = vpop.permute.xlu1 %1529 }
 0x70d   :  { %v1883_v14 = vpop.f32.mrf.mxu0 }
 0x70e   :  { %v1307_v17 = vadd.f32 %v1883_v14, %v1191_v13 }
 0x70f   :  { %v1287_v18 = vpop.f32.mrf.mxu0 }
 0x710   :  { %v1306_v20 = vadd.f32 %v1287_v18, %v1186_v16  ;;  %v2403_v21 = vadd.f32 %v1893_v10, %v1307_v17 }
 0x711   :  { %v1886_v24 = vpop.f32.mrf.mxu0 }
 0x712   :  { %v1309_v26 = vadd.f32 %v1886_v24, %v1201_v19  ;;  %v2405_v27 = vadd.f32 %v1393_v15, %v1306_v20  ;;  %v1427_v28 = vsel %vm181_vm4, %v2403_v21, 0.0  ;;  %v1441_v29 = vmul.f32 %v2403_v21, %v2403_v21 }
 0x713   :  { %1428 = vadd.xlane.f32.xlu0 %v1427_v28  ;;  %v1297_v30 = vpop.f32.mrf.mxu0 }
 0x714   :  { %v1308_v31 = vadd.f32 %v1297_v30, %v1196_v23  ;;  %v1447_v32 = vsel %vm181_vm4, %v1441_v29, 0.0  ;;  %v1415_v34 = vadd.f32 %v1896_v25, %v1309_v26  ;;  %v1424_v36 = vsel %vm181_vm4, %v2405_v27, 0.0 }
 0x715   :  { %1448 = vadd.xlane.f32.xlu1 %v1447_v32  ;;  %v1440_v42 = vmul.f32 %v2405_v27, %v2405_v27 }
 0x716   :  { %v2412_v35 = vadd.f32 %v1403_v33, %v1308_v31  ;;  %v1433_v40 = vsel %vm181_vm4, %v1415_v34, 0.0  ;;  %v1443_v45 = vmul.f32 %v1415_v34, %v1415_v34 }
 0x717   :  { %1425 = vadd.xlane.f32.xlu0 %v1424_v36  ;;  %v1444_v43 = vsel %vm181_vm4, %v1440_v42, 0.0 }
 0x718   :  { %v1430_v39 = vsel %vm181_vm4, %v2412_v35, 0.0  ;;  %v1453_v46 = vsel %vm181_vm4, %v1443_v45, 0.0  ;;  %v1442_v52 = vmul.f32 %v2412_v35, %v2412_v35 }
 0x719   :  { %1431 = vadd.xlane.f32.xlu1 %v1430_v39 }
 0x71a   :  { %v1450_v53 = vsel %vm181_vm4, %v1442_v52, 0.0 }
 0x71b   :  { %1434 = vadd.xlane.f32.xlu0 %v1433_v40 }
 0x71f   :  { %1445 = vadd.xlane.f32.xlu0 %v1444_v43 }
 0x723   :  { %1454 = vadd.xlane.f32.xlu0 %v1453_v46 }
 0x72a   :  { %1524 = vperm.xlu1 %1918, %v1422_v47  }
 0x739   :  { %1478 = vperm.xlu0 %1919, %v1416_v48  }
 0x73d   :  { %1519 = vperm.xlu0 %1919, %v1421_v50  }
 0x741   :  { %923 = vperm.xlu0 %1919, %v920_v51  }
 0x74e   :  { %1451 = vadd.xlane.f32.xlu1 %v1450_v53 }
 0x75f   :  { %1514 = vperm.xlu1 %1918, %v1420_v54  }
 0x763   :  { %1552 = vperm.xlu1 %1918, %v1549_v55  }
 0x79c   :  { %v1429_v7 = vpop.xlane.xlu0 %1428 }
 0x79d   :  { %v1437_v14 = vmul.f32 0.125, %v1429_v7 }
 0x79e   :  { %v1449_v12 = vpop.xlane.xlu1 %1448 }
 0x79f   :  { %v1461_v16 = vmul.f32 %v1437_v14, %v1437_v14  ;;  %v1457_v17 = vmul.f32 0.125, %v1449_v12  ;;  %v1473_v42 = vsub.f32 %v2403_v21, %v1437_v14 }
 0x7a0   :  { %v1426_v22 = vpop.xlane.xlu0 %1425 }
 0x7a1   :  { %v1436_v18 = vmul.f32 0.125, %v1426_v22  ;;  %v1497_v47 = vmul.f32 %v1484_v0, %v1473_v42 }
 0x7a2   :  { %v1432_v19 = vpop.xlane.xlu1 %1431 }
 0x7a3   :  { %v1460_v23 = vmul.f32 %v1436_v18, %v1436_v18  ;;  %v1438_v28 = vmul.f32 0.125, %v1432_v19  ;;  %v1472_v46 = vsub.f32 %v2405_v27, %v1436_v18 }
 0x7a4   :  { %v1435_v57 = vpop.xlane.xlu0 %1434 }
 0x7a5   :  { %v1439_v49 = vmul.f32 0.125, %v1435_v57  ;;  %v1462_v32 = vmul.f32 %v1438_v28, %v1438_v28  ;;  %v1474_v43 = vsub.f32 %v2412_v35, %v1438_v28 }
 0x7a6   :  { %v1525_v25 = vpop.permute.xlu1 %1524 }
 0x7a7   :  { %v1463_v59 = vmul.f32 %v1439_v49, %v1439_v49  ;;  %v1475_v3 = vsub.f32 %v1415_v34, %v1439_v49  ;;  %v1498_v50 = vmul.f32 %v2444_v56, %v1474_v43  ;;  %v1548_v56 = vld [vmem:[%s2480_s15] sm:$0xff] }
 0x7a8   :  { %v1446_v11 = vpop.xlane.xlu0 %1445 }
 0x7a9   :  { %v1499_v5 = vmul.f32 %v1494_v41, %v1475_v3  ;;  %v1456_v20 = vmul.f32 0.125, %v1446_v11 }
 0x7ab   :  { %v1464_v24 = vsub.f32 %v1456_v20, %v1460_v23 }
 0x7ac   :  { %v1455_v58 = vpop.xlane.xlu0 %1454 }
 0x7ad   :  { %v1459_v60 = vmul.f32 0.125, %v1455_v58  ;;  %v1468_v29 = vmax.f32 %v1464_v24, 0.0 }
 0x7af   :  { %v1467_v61 = vsub.f32 %v1459_v60, %v1463_v59  ;;  %v1500_v34 = vadd.f32 1e-05, %v1468_v29 }
 0x7b1   :  { %v1471_v37 = vmax.f32 %v1467_v61, 0.0 }
 0x7b3   :  { %v1503_v62 = vadd.f32 1e-05, %v1471_v37 }
 0x7b4   :  { %v1479_v38 = vpop.permute.xlu0 %1478 }
 0x7b5   :  { %1934 = vrsqrt.f32 %v1503_v62  ;;  %v1496_v51 = vmul.f32 %v1479_v38, %v1472_v46 }
 0x7b8   :  { %v1520_v44 = vpop.permute.xlu0 %1519 }
 0x7bc   :  { %v924_v63 = vpop.permute.xlu0 %923 }
 0x7bd   :  { %v996_v4 = vadd.f32 %v2401_v2, %v924_v63  ;;  %v1465_v2 = vsub.f32 %v1457_v17, %v1461_v16 }
 0x7bf   :  { %1000 = vst.msk [vmem:[#allocation2] sm:$0x7] %vm999_vm14, %v996_v4  ;;  %v1469_v26 = vmax.f32 %v1465_v2, 0.0 }
 0x7c1   :  { %v1501_v31 = vadd.f32 1e-05, %v1469_v26 }
 0x7c2   :  { %v1935_v6 = vpop.eup %1934 }
 0x7c3   :  { %v1511_v9 = vmul.f32 %v1935_v6, %v1499_v5  ;;  %1936 = vrsqrt.f32 %v1501_v31 }
 0x7c4   :  { %1938 = vrsqrt.f32 %v1500_v34 }
 0x7c5   :  { %v1535_v10 = vadd.f32 %v1530_v8, %v1511_v9 }
 0x7c7   :  { %vm1539_vm15 = vcmp.ge.f32.partialorder %v1535_v10, 0.0  ;;  %v1543_v13 = vmul.f32 0.2, %v1535_v10 }
 0x7c9   :  { %v1547_v15 = vsel %vm1539_vm15, %v1535_v10, %v1543_v13 }
 0x7ca   :  { %1898 = vmatpush3.msra.mxu0 %v1547_v15 }
 0x7cb   :  { %1899 = vmatprep.subr.mxu0 %v1986_v1 }
 0x7d0   :  { %v1937_v45 = vpop.eup %1936 }
 0x7d1   :  { %v1939_v48 = vpop.eup %1938  ;;  %v1509_v52 = vmul.f32 %v1937_v45, %v1497_v47 }
 0x7d2   :  { %v1508_v7 = vmul.f32 %v1939_v48, %v1496_v51 }
 0x7d3   :  { %v1533_v55 = vadd.f32 %v1520_v44, %v1509_v52 }
 0x7d5   :  { %v1541_v49 = vmul.f32 0.2, %v1533_v55  ;;  %vm1537_vm1 = vcmp.ge.f32.partialorder %v1533_v55, 0.0 }
 0x7d7   :  { %v1452_v30 = vpop.xlane.xlu1 %1451  ;;  %v1545_v27 = vsel %vm1537_vm1, %v1533_v55, %v1541_v49 }
 0x7d8   :  { %v1458_v33 = vmul.f32 0.125, %v1452_v30 }
 0x7da   :  { %v1466_v36 = vsub.f32 %v1458_v33, %v1462_v32 }
 0x7db   :  { %v1515_v54 = vpop.permute.xlu1 %1514 }
 0x7dc   :  { %v1470_v39 = vmax.f32 %v1466_v36, 0.0  ;;  %v1532_v57 = vadd.f32 %v1515_v54, %v1508_v7 }
 0x7de   :  { %v1502_v40 = vadd.f32 1e-05, %v1470_v39  ;;  %v1540_v35 = vmul.f32 0.2, %v1532_v57  ;;  %vm1536_vm2 = vcmp.ge.f32.partialorder %v1532_v57, 0.0 }
 0x7e0   :  { %1940 = vrsqrt.f32 %v1502_v40  ;;  %v1544_v59 = vsel %vm1536_vm2, %v1532_v57, %v1540_v35 }
 0x7ed   :  { %v1941_v53 = vpop.eup %1940 }
 0x7ee   :  { %v1510_v22 = vmul.f32 %v1941_v53, %v1498_v50 }
 0x7f0   :  { %v1534_v11 = vadd.f32 %v1525_v25, %v1510_v22 }
 0x7f2   :  { %vm1538_vm0 = vcmp.ge.f32.partialorder %v1534_v11, 0.0  ;;  %v1542_v21 = vmul.f32 0.2, %v1534_v11 }
 0x7f4   :  { %v1546_v58 = vsel %vm1538_vm0, %v1534_v11, %v1542_v21 }
 0x7f5   :  { %1900 = vmatpush3.msra.mxu0 %v1546_v58 }
 0x7f6   :  { %1901 = vmatprep.subr.mxu0 %v1986_v1 }
 0x7f7   :  { %1902 = vmatpush3.msra.mxu0 %v1545_v27 }
 0x7f8   :  { %1903 = vmatprep.subr.mxu0 %v1986_v1 }
 0x7f9   :  { %1904 = vmatpush3.msra.mxu0 %v1544_v59 }
 0x7fa   :  { %1906 = vmatmul.mubr.msk.f32.vlgmr.msra.gmra.mxu0 %vm204_vm5, %v1548_v56 }
 0x7fb   :  { %1953 = shalt.err (!%p1950_p4)
}
 0x7fc   :  { %1638 = dma.vmem_to_hbm [thread:$0]  %s1636_s23, 64, %s2482_s17, [#allocation3]   ;;  %v1553_v1 = vpop.permute.xlu1 %1552 }
 0x7fd   :  { %s1995_s15 = smov [#allocation4]  }
 0x7fe   :  { %s1645_s27 = sshll.u32 %s1995_s15, 4  ;;  %s1646_s27 = int_to_ptr.vmem [resolvable:$true] %s1645_s27 }
 0x7ff   :  { %s1962_s6 = scalar_lea.vmem %s1646_s27, 128  ;;  %p1967_p6 = scmp.lt.s32.totalorder %s1646_s27, %s1646_s27 }
 0x800   :  { %p1963_p5 = scmp.ne.s32.totalorder %s1646_s27, %s1962_s6  ;;  %p1968_p7 = scmp.lt.s32.totalorder %s1962_s6, %s1962_s6 }
 0x802   :  { %p1969_p8 = por %p1968_p7, %p1967_p6 }
 0x804   :  { %p1970_p9 = pnand %p1969_p8, %p1963_p5 }
 0x8ba   :  { %v1624_v60 = vpop.f32.mrf.mxu0 }
 0x8bb   :  { %v1625_v61 = vadd.f32 %v1624_v60, %v1553_v1 }
 0x8bc   :  { %v1907_v37 = vpop.f32.mrf.mxu0 }
 0x8bd   :  { %1628 = vst.msk [vmem:[#allocation4] sm:$0xff] %vm181_vm4, %v1625_v61 }
 0x8be   :  { %1973 = shalt.err (!%p1970_p9)
}
 0x8bf   :  { %1648 = dma.vmem_to_hbm [thread:$0]  %s1646_s27, 128, %s2483_s18, [#allocation5]  }
 0x8c0   :  { %1982 = dma.done.wait [#allocation3], 64  }
 0x8c1   :  { %1983 = vsyncadd [#allocation3], 4294967232 }
 0x8c2   :  { %1984 = dma.done.wait [#allocation5], 128  }
 0x8c3   :  { %1985 = vsyncadd [#allocation5], 4294967168 }
 0x8c4   :  { %1655 = vsyncpa [#allocation3], 1 }
 0x8c5   :  { %1656 = vsyncpa [#allocation5], 1 }

</bundles_post_ra>
